<compile_context>
chip_gen: v5e
topology: v5e:2x2
jax: 0.10.0
libtpu: 0.0.40
codegen_flags: <defaults>
</compile_context>

<pallas_src>
import functools

import jax
import jax.numpy as jnp
from jax.experimental import pallas as pl
from jax.experimental.pallas import tpu as pltpu


# ---------------------------------------------------------------------------
# Fully fused per-batch-element unit kernel
# ---------------------------------------------------------------------------

def _make_unit_kernel(stride, Hs, Ws, Cin, Cout, Ho, Wo, resize):
    """Whole DIAPreResUnit (non-bottleneck) for one batch element, in VMEM."""

    def kernel(*refs):
        x_ref, s1_ref, t1_ref, w1_ref = refs[:4]
        pos = 4
        wid_ref = None
        if resize:
            wid_ref = refs[pos]; pos += 1
        (s2_ref, t2_ref, w2_ref,
         wx1_ref, bx1_ref, wx2_ref, bx2_ref,
         wh1_ref, bh1_ref, wh2_ref, bh2_ref,
         h0_ref, c0_ref) = refs[pos:pos + 13]
        pos += 13
        out_ref, h_ref, c_ref = refs[pos:pos + 3]
        pad1_ref, pad2_ref = refs[pos + 3:pos + 5]

        # --- fused inference-BatchNorm1 + ReLU (the pre-activation) ------------
        x = x_ref[0]                                       # (nph*Hs, Ws, Cin) f32
        act1 = jnp.maximum(x * s1_ref[...].reshape(1, 1, Cin)
                           + t1_ref[...].reshape(1, 1, Cin), 0.0)

        # --- scatter the activation into a zero-padded VMEM scratch -----------
        # (phase-decomposed for stride 2 so every conv tap below is a contiguous
        #  static slice -- no strided loads, no im2col in HBM)
        pad1_ref[...] = jnp.zeros(pad1_ref.shape, pad1_ref.dtype)
        if stride == 1:
            pad1_ref[0, 1:Hs + 1, 1:Ws + 1, :] = act1
        else:
            for qy in range(2):
                for qx in range(2):
                    a_q = act1[(qy * 2 + qx) * Hs:(qy * 2 + qx + 1) * Hs]
                    p_idx = ((qy + 1) % 2) * 2 + ((qx + 1) % 2)
                    r0 = (qy + 1) // 2
                    c0 = (qx + 1) // 2
                    pad1_ref[p_idx, r0:r0 + Hs, c0:c0 + Ws, :] = a_q

        # --- conv1: 3x3 (stride) as 9 shifted bf16 MXU matmuls, f32 accum -----
        acc1 = jnp.zeros((Ho * Wo, Cout), jnp.float32)
        for dy in range(3):
            for dx in range(3):
                if stride == 1:
                    slab = pad1_ref[0, dy:dy + Ho, dx:dx + Wo, :]
                else:
                    slab = pad1_ref[(dy % 2) * 2 + (dx % 2),
                                    dy // 2:dy // 2 + Ho,
                                    dx // 2:dx // 2 + Wo, :]
                acc1 = acc1 + jnp.dot(
                    slab.reshape(Ho * Wo, Cin).astype(jnp.bfloat16),
                    w1_ref[dy * 3 + dx],
                    preferred_element_type=jnp.float32)

        # --- identity branch: 1x1 conv with `stride` on the pre-activation ----
        if resize:
            # for stride 2 the strided input is exactly phase (0, 0)
            id_in = act1[0:Hs] if stride == 2 else act1
            identity = jnp.dot(id_in.reshape(Ho * Wo, Cin).astype(jnp.bfloat16),
                               wid_ref[...],
                               preferred_element_type=jnp.float32)
        else:
            identity = x.reshape(Ho * Wo, Cin)             # Cin == Cout here

        # --- fused BN2 + ReLU, zero-pad, conv2 (3x3, stride 1) -----------------
        act2 = jnp.maximum(acc1 * s2_ref[...] + t2_ref[...], 0.0)   # (Ho*Wo, Cout)
        pad2_ref[...] = jnp.zeros(pad2_ref.shape, pad2_ref.dtype)
        for y in range(Ho):        # row-wise scatter: 2-D stores, no value reshape
            pad2_ref[0, y + 1, 1:Wo + 1, :] = act2[y * Wo:(y + 1) * Wo, :]

        body = jnp.zeros((Ho * Wo, Cout), jnp.float32)
        for dy in range(3):
            for dx in range(3):
                slab = pad2_ref[0, dy:dy + Ho, dx:dx + Wo, :]
                body = body + jnp.dot(
                    slab.reshape(Ho * Wo, Cout).astype(jnp.bfloat16),
                    w2_ref[dy * 3 + dx],
                    preferred_element_type=jnp.float32)

        # --- DIA attention: global avg pool -> 1-layer DIA LSTM cell ----------
        pooled = jnp.mean(body, axis=0, keepdims=True)     # (1, Cout)

        def amp(v, w_a, b_a, w_b, b_b):                    # FirstLSTMAmp: fc-ReLU-fc
            t = jnp.maximum(
                jnp.dot(v, w_a, preferred_element_type=jnp.float32) + b_a, 0.0)
            return jnp.dot(t, w_b, preferred_element_type=jnp.float32) + b_b

        h0 = h0_ref[0]                                     # (1, Cout)
        c0 = c0_ref[0]
        gates = (amp(pooled, wx1_ref[...], bx1_ref[...], wx2_ref[...], bx2_ref[...]) +
                 amp(h0,     wh1_ref[...], bh1_ref[...], wh2_ref[...], bh2_ref[...]))
        i_g = jax.nn.sigmoid(gates[:, 0 * Cout:1 * Cout])
        f_g = jax.nn.sigmoid(gates[:, 1 * Cout:2 * Cout])
        g_g = jnp.tanh(gates[:, 2 * Cout:3 * Cout])
        o_g = jax.nn.sigmoid(gates[:, 3 * Cout:4 * Cout])
        c_new = f_g * c0 + i_g * g_g
        h_new = o_g * jax.nn.sigmoid(c_new)                # DIA: sigmoid(c), not tanh(c)

        # --- channel gating + residual add -------------------------------------
        out_ref[0] = body * h_new + identity
        h_ref[0] = h_new
        c_ref[0] = c_new

    return kernel


def _fused_dia_preres_unit(x_nhwc, s1, t1, w1_bf16, wid_bf16, s2, t2, w2_bf16,
                           lstm, h0, c0, stride):
    B, H, W, Cin = x_nhwc.shape
    Cout = w1_bf16.shape[-1]
    s = int(stride)
    if s not in (1, 2):
        raise NotImplementedError("only stride 1 / 2 (ResNet family) is supported")
    if s == 2 and (H % 2 or W % 2):
        raise NotImplementedError("stride-2 unit expects even spatial dims")
    Hs, Ws = H // s, W // s
    Ho = (H + 2 - 3) // s + 1
    Wo = (W + 2 - 3) // s + 1
    nph = s * s
    resize = wid_bf16 is not None
    mid = lstm["wx1"].shape[1]

    if s == 1:
        x_ph = x_nhwc
        pad1_shape = (1, H + 2, W + 2, Cin)
    else:
        # space-to-phase split, done once in XLA (1x data movement)
        x_ph = (x_nhwc.reshape(B, Hs, s, Ws, s, Cin)
                .transpose(0, 2, 4, 1, 3, 5)
                .reshape(B, nph * Hs, Ws, Cin))
        pad1_shape = (nph, Hs + 1, Ws + 1, Cin)
    pad2_shape = (1, Ho + 2, Wo + 2, Cout)

    kernel = _make_unit_kernel(s, Hs, Ws, Cin, Cout, Ho, Wo, resize)

    def rep(shape):                     # block replicated across the batch grid
        return pl.BlockSpec(shape, lambda b, _n=len(shape): (0,) * _n)

    in_specs = [pl.BlockSpec((1, nph * Hs, Ws, Cin), lambda b: (b, 0, 0, 0)),
                rep((1, Cin)), rep((1, Cin)), rep((9, Cin, Cout))]
    inputs = [x_ph,
              s1.reshape(1, Cin).astype(jnp.float32),
              t1.reshape(1, Cin).astype(jnp.float32),
              w1_bf16]
    if resize:
        in_specs.append(rep((Cin, Cout)))
        inputs.append(wid_bf16)
    in_specs += [rep((1, Cout)), rep((1, Cout)), rep((9, Cout, Cout)),
                 rep((Cout, mid)), rep((1, mid)), rep((mid, 4 * Cout)), rep((1, 4 * Cout)),
                 rep((Cout, mid)), rep((1, mid)), rep((mid, 4 * Cout)), rep((1, 4 * Cout)),
                 pl.BlockSpec((1, 1, Cout), lambda b: (b, 0, 0)),
                 pl.BlockSpec((1, 1, Cout), lambda b: (b, 0, 0))]
    inputs += [s2.reshape(1, Cout).astype(jnp.float32),
               t2.reshape(1, Cout).astype(jnp.float32),
               w2_bf16,
               lstm["wx1"], lstm["bx1"].reshape(1, -1),
               lstm["wx2"], lstm["bx2"].reshape(1, -1),
               lstm["wh1"], lstm["bh1"].reshape(1, -1),
               lstm["wh2"], lstm["bh2"].reshape(1, -1),
               h0.reshape(B, 1, Cout), c0.reshape(B, 1, Cout)]

    out, h_new, c_new = pl.pallas_call(
        kernel,
        out_shape=(jax.ShapeDtypeStruct((B, Ho * Wo, Cout), jnp.float32),
                   jax.ShapeDtypeStruct((B, 1, Cout), jnp.float32),
                   jax.ShapeDtypeStruct((B, 1, Cout), jnp.float32)),
        grid=(B,),
        in_specs=in_specs,
        out_specs=(pl.BlockSpec((1, Ho * Wo, Cout), lambda b: (b, 0, 0)),
                   pl.BlockSpec((1, 1, Cout), lambda b: (b, 0, 0)),
                   pl.BlockSpec((1, 1, Cout), lambda b: (b, 0, 0))),
        scratch_shapes=[pltpu.VMEM(pad1_shape, jnp.float32),
                        pltpu.VMEM(pad2_shape, jnp.float32)],
        compiler_params=pltpu.CompilerParams(dimension_semantics=("parallel",)),
    )(*inputs)
    return out, h_new.reshape(B, Cout), c_new.reshape(B, Cout), Ho, Wo


# ---------------------------------------------------------------------------
# Forward pass (glue: layout plumbing + BN folding only)
# ---------------------------------------------------------------------------

def _bn_affine(bn, eps=1e-5):
    scale = bn["gamma"] / jnp.sqrt(bn["var"] + eps)
    shift = bn["beta"] - bn["mean"] * scale
    return scale, shift


def dia_preres_unit_forward(x_nchw, params, stride, hc=None):
    b, cin, h, w = x_nchw.shape
    cout = params["conv1_w"].shape[0]
    resize_identity = (cin != cout) or (stride != 1)
    x = jnp.transpose(x_nchw, (0, 2, 3, 1)).astype(jnp.float32)          # NHWC

    s1, t1 = _bn_affine(params["bn1"])
    s2, t2 = _bn_affine(params["bn2"])
    w1 = jnp.transpose(params["conv1_w"], (2, 3, 1, 0)).reshape(9, cin, cout).astype(jnp.bfloat16)
    w2 = jnp.transpose(params["conv2_w"], (2, 3, 1, 0)).reshape(9, cout, cout).astype(jnp.bfloat16)
    wid = None
    if resize_identity:
        wid = jnp.transpose(params["id_w"], (2, 3, 1, 0)).reshape(cin, cout).astype(jnp.bfloat16)

    if hc is None:
        h0 = jnp.zeros((b, cout), jnp.float32)
        c0 = jnp.zeros((b, cout), jnp.float32)
    else:
        h0, c0 = hc[0][0], hc[1][0]

    out3d, h_new, c_new, ho, wo = _fused_dia_preres_unit(
        x, s1, t1, w1, wid, s2, t2, w2, params["lstm"], h0, c0, stride)

    out = jnp.transpose(out3d.reshape(b, ho, wo, cout), (0, 3, 1, 2))    # back to NCHW
    return out, (h_new[None], c_new[None])


# ---------------------------------------------------------------------------
# Deterministic parameter initialization (synthetic)
# ---------------------------------------------------------------------------

def init_params(key, in_channels, out_channels):
    ks = jax.random.split(key, 13)
    mid = out_channels // 4   # FirstLSTMAmp hidden size

    def nrm(k, shape, s=0.1):
        return s * jax.random.normal(k, shape, jnp.float32)

    def bn(k, c):
        k1, k2, k3, k4 = jax.random.split(k, 4)
        return {"gamma": 1.0 + 0.1 * jax.random.normal(k1, (c,), jnp.float32),
                "beta": 0.1 * jax.random.normal(k2, (c,), jnp.float32),
                "mean": 0.1 * jax.random.normal(k3, (c,), jnp.float32),
                "var": 0.5 + 0.1 * jnp.abs(jax.random.normal(k4, (c,), jnp.float32))}

    return {
        "bn1": bn(ks[0], in_channels),
        "conv1_w": nrm(ks[1], (out_channels, in_channels, 3, 3)),
        "bn2": bn(ks[2], out_channels),
        "conv2_w": nrm(ks[3], (out_channels, out_channels, 3, 3)),
        "id_w": nrm(ks[4], (out_channels, in_channels, 1, 1)),
        "lstm": {
            "wx1": nrm(ks[5], (out_channels, mid), 0.2),
            "bx1": nrm(ks[6], (mid,), 0.05),
            "wx2": nrm(ks[7], (mid, 4 * out_channels), 0.2),
            "bx2": nrm(ks[8], (4 * out_channels,), 0.05),
            "wh1": nrm(ks[9], (out_channels, mid), 0.2),
            "bh1": nrm(ks[10], (mid,), 0.05),
            "wh2": nrm(ks[11], (mid, 4 * out_channels), 0.2),
            "bh2": nrm(ks[12], (4 * out_channels,), 0.05),
        },
    }


if __name__ == "__main__":
    key = jax.random.PRNGKey(0)
    kx, kp = jax.random.split(key)

    B, Cin, H, W = 2, 4, 16, 16
    Cout, stride = 8, 2          # resize_identity path, non-bottleneck body

    x = jax.random.normal(kx, (B, Cin, H, W), jnp.float32)
    params = init_params(kp, Cin, Cout)

    fwd = jax.jit(functools.partial(dia_preres_unit_forward, stride=stride))
    out, (h_state, c_state) = fwd(x, params)
    jax.block_until_ready(out)
    jax.block_until_ready(h_state)
    jax.block_until_ready(c_state)

    assert out.shape == (B, Cout, H // stride, W // stride)
    assert h_state.shape == (1, B, Cout) and c_state.shape == (1, B, Cout)
    print("KERNEL_OK")
</pallas_src>

<mosaic_0001>
module attributes {stable_mosaic.version = 11 : i64} {
  func.func @kernel(%arg0: i32, %arg1: memref<1x32x8x4xf32, #tpu.memory_space<vmem>>, %arg2: memref<1x4xf32, #tpu.memory_space<vmem>>, %arg3: memref<1x4xf32, #tpu.memory_space<vmem>>, %arg4: memref<9x4x8xbf16, #tpu.memory_space<vmem>>, %arg5: memref<4x8xbf16, #tpu.memory_space<vmem>>, %arg6: memref<1x8xf32, #tpu.memory_space<vmem>>, %arg7: memref<1x8xf32, #tpu.memory_space<vmem>>, %arg8: memref<9x8x8xbf16, #tpu.memory_space<vmem>>, %arg9: memref<8x2xf32, #tpu.memory_space<vmem>>, %arg10: memref<1x2xf32, #tpu.memory_space<vmem>>, %arg11: memref<2x32xf32, #tpu.memory_space<vmem>>, %arg12: memref<1x32xf32, #tpu.memory_space<vmem>>, %arg13: memref<8x2xf32, #tpu.memory_space<vmem>>, %arg14: memref<1x2xf32, #tpu.memory_space<vmem>>, %arg15: memref<2x32xf32, #tpu.memory_space<vmem>>, %arg16: memref<1x32xf32, #tpu.memory_space<vmem>>, %arg17: memref<1x1x8xf32, #tpu.memory_space<vmem>>, %arg18: memref<1x1x8xf32, #tpu.memory_space<vmem>>, %arg19: memref<1x64x8xf32, #tpu.memory_space<vmem>>, %arg20: memref<1x1x8xf32, #tpu.memory_space<vmem>>, %arg21: memref<1x1x8xf32, #tpu.memory_space<vmem>>, %arg22: memref<4x9x9x4xf32, #tpu.memory_space<vmem>>, %arg23: memref<1x10x10x8xf32, #tpu.memory_space<vmem>>) attributes {dimension_semantics = [#tpu.dimension_semantics<parallel>], iteration_bounds = array<i64: 2>, scalar_prefetch = 0 : i64, scratch_operands = 2 : i64, tpu.core_type = #tpu.core_type<tc>, window_params = [{transform_indices = @transform_0, window_bounds = array<i64: 1, 32, 8, 4>}, {pipeline_mode = #tpu.pipeline_mode<synchronous>, transform_indices = @transform_1, window_bounds = array<i64: 1, 4>}, {pipeline_mode = #tpu.pipeline_mode<synchronous>, transform_indices = @transform_2, window_bounds = array<i64: 1, 4>}, {pipeline_mode = #tpu.pipeline_mode<synchronous>, transform_indices = @transform_3, window_bounds = array<i64: 9, 4, 8>}, {pipeline_mode = #tpu.pipeline_mode<synchronous>, transform_indices = @transform_4, window_bounds = array<i64: 4, 8>}, {pipeline_mode = #tpu.pipeline_mode<synchronous>, transform_indices = @transform_5, window_bounds = array<i64: 1, 8>}, {pipeline_mode = #tpu.pipeline_mode<synchronous>, transform_indices = @transform_6, window_bounds = array<i64: 1, 8>}, {pipeline_mode = #tpu.pipeline_mode<synchronous>, transform_indices = @transform_7, window_bounds = array<i64: 9, 8, 8>}, {pipeline_mode = #tpu.pipeline_mode<synchronous>, transform_indices = @transform_8, window_bounds = array<i64: 8, 2>}, {pipeline_mode = #tpu.pipeline_mode<synchronous>, transform_indices = @transform_9, window_bounds = array<i64: 1, 2>}, {pipeline_mode = #tpu.pipeline_mode<synchronous>, transform_indices = @transform_10, window_bounds = array<i64: 2, 32>}, {pipeline_mode = #tpu.pipeline_mode<synchronous>, transform_indices = @transform_11, window_bounds = array<i64: 1, 32>}, {pipeline_mode = #tpu.pipeline_mode<synchronous>, transform_indices = @transform_12, window_bounds = array<i64: 8, 2>}, {pipeline_mode = #tpu.pipeline_mode<synchronous>, transform_indices = @transform_13, window_bounds = array<i64: 1, 2>}, {pipeline_mode = #tpu.pipeline_mode<synchronous>, transform_indices = @transform_14, window_bounds = array<i64: 2, 32>}, {pipeline_mode = #tpu.pipeline_mode<synchronous>, transform_indices = @transform_15, window_bounds = array<i64: 1, 32>}, {transform_indices = @transform_16, window_bounds = array<i64: 1, 1, 8>}, {transform_indices = @transform_17, window_bounds = array<i64: 1, 1, 8>}, {transform_indices = @transform_18, window_bounds = array<i64: 1, 64, 8>}, {transform_indices = @transform_19, window_bounds = array<i64: 1, 1, 8>}, {transform_indices = @transform_20, window_bounds = array<i64: 1, 1, 8>}]} {
    %c0 = arith.constant 0 : index
    %c0_0 = arith.constant 0 : index
    %c0_1 = arith.constant 0 : index
    %c0_2 = arith.constant 0 : index
    %0 = vector.load %arg1[%c0, %c0_0, %c0_1, %c0_2] : memref<1x32x8x4xf32, #tpu.memory_space<vmem>>, vector<1x32x8x4xf32>
    %1 = vector.shape_cast %0 : vector<1x32x8x4xf32> to vector<32x8x4xf32>
    %c0_3 = arith.constant 0 : index
    %c0_4 = arith.constant 0 : index
    %2 = vector.load %arg2[%c0_3, %c0_4] : memref<1x4xf32, #tpu.memory_space<vmem>>, vector<1x4xf32>
    %3 = vector.shape_cast %2 : vector<1x4xf32> to vector<1x1x4xf32>
    %4 = vector.broadcast %3 : vector<1x1x4xf32> to vector<32x8x4xf32>
    %5 = arith.mulf %1, %4 : vector<32x8x4xf32>
    %c0_5 = arith.constant 0 : index
    %c0_6 = arith.constant 0 : index
    %6 = vector.load %arg3[%c0_5, %c0_6] : memref<1x4xf32, #tpu.memory_space<vmem>>, vector<1x4xf32>
    %7 = vector.shape_cast %6 : vector<1x4xf32> to vector<1x1x4xf32>
    %8 = vector.broadcast %7 : vector<1x1x4xf32> to vector<32x8x4xf32>
    %9 = arith.addf %5, %8 : vector<32x8x4xf32>
    %cst = arith.constant 0.000000e+00 : f32
    %10 = vector.broadcast %cst : f32 to vector<32x8x4xf32>
    %11 = arith.maximumf %9, %10 : vector<32x8x4xf32>
    %cst_7 = arith.constant 0.000000e+00 : f32
    %12 = vector.broadcast %cst_7 : f32 to vector<4x9x9x4xf32>
    %c0_8 = arith.constant 0 : index
    %c0_9 = arith.constant 0 : index
    %c0_10 = arith.constant 0 : index
    %c0_11 = arith.constant 0 : index
    %13 = vector.load %arg22[%c0_8, %c0_9, %c0_10, %c0_11] : memref<4x9x9x4xf32, #tpu.memory_space<vmem>>, vector<4x9x9x4xf32>
    tpu.vector_store %arg22[%c0_8, %c0_9, %c0_10, %c0_11], %12 {strides = array<i32>} : memref<4x9x9x4xf32, #tpu.memory_space<vmem>>, vector<4x9x9x4xf32>,
    %14 = vector.extract_strided_slice %11 {offsets = [0, 0, 0], sizes = [8, 8, 4], strides = [1, 1, 1]} : vector<32x8x4xf32> to vector<8x8x4xf32>
    %c3 = arith.constant 3 : index
    %c0_12 = arith.constant 0 : index
    %c0_13 = arith.constant 0 : index
    %c0_14 = arith.constant 0 : index
    %15 = vector.load %arg22[%c3, %c0_12, %c0_13, %c0_14] : memref<4x9x9x4xf32, #tpu.memory_space<vmem>>, vector<1x8x8x4xf32>
    %16 = vector.shape_cast %15 : vector<1x8x8x4xf32> to vector<8x8x4xf32>
    %17 = vector.shape_cast %14 : vector<8x8x4xf32> to vector<1x8x8x4xf32>
    tpu.vector_store %arg22[%c3, %c0_12, %c0_13, %c0_14], %17 {strides = array<i32>} : memref<4x9x9x4xf32, #tpu.memory_space<vmem>>, vector<1x8x8x4xf32>,
    %18 = vector.extract_strided_slice %11 {offsets = [8, 0, 0], sizes = [8, 8, 4], strides = [1, 1, 1]} : vector<32x8x4xf32> to vector<8x8x4xf32>
    %c2 = arith.constant 2 : index
    %c0_15 = arith.constant 0 : index
    %c1 = arith.constant 1 : index
    %c0_16 = arith.constant 0 : index
    %19 = vector.load %arg22[%c2, %c0_15, %c1, %c0_16] : memref<4x9x9x4xf32, #tpu.memory_space<vmem>>, vector<1x8x8x4xf32>
    %20 = vector.shape_cast %19 : vector<1x8x8x4xf32> to vector<8x8x4xf32>
    %21 = vector.shape_cast %18 : vector<8x8x4xf32> to vector<1x8x8x4xf32>
    tpu.vector_store %arg22[%c2, %c0_15, %c1, %c0_16], %21 {strides = array<i32>} : memref<4x9x9x4xf32, #tpu.memory_space<vmem>>, vector<1x8x8x4xf32>,
    %22 = vector.extract_strided_slice %11 {offsets = [16, 0, 0], sizes = [8, 8, 4], strides = [1, 1, 1]} : vector<32x8x4xf32> to vector<8x8x4xf32>
    %c1_17 = arith.constant 1 : index
    %c1_18 = arith.constant 1 : index
    %c0_19 = arith.constant 0 : index
    %c0_20 = arith.constant 0 : index
    %23 = vector.load %arg22[%c1_17, %c1_18, %c0_19, %c0_20] : memref<4x9x9x4xf32, #tpu.memory_space<vmem>>, vector<1x8x8x4xf32>
    %24 = vector.shape_cast %23 : vector<1x8x8x4xf32> to vector<8x8x4xf32>
    %25 = vector.shape_cast %22 : vector<8x8x4xf32> to vector<1x8x8x4xf32>
    tpu.vector_store %arg22[%c1_17, %c1_18, %c0_19, %c0_20], %25 {strides = array<i32>} : memref<4x9x9x4xf32, #tpu.memory_space<vmem>>, vector<1x8x8x4xf32>,
    %26 = vector.extract_strided_slice %11 {offsets = [24, 0, 0], sizes = [8, 8, 4], strides = [1, 1, 1]} : vector<32x8x4xf32> to vector<8x8x4xf32>
    %c0_21 = arith.constant 0 : index
    %c1_22 = arith.constant 1 : index
    %c1_23 = arith.constant 1 : index
    %c0_24 = arith.constant 0 : index
    %27 = vector.load %arg22[%c0_21, %c1_22, %c1_23, %c0_24] : memref<4x9x9x4xf32, #tpu.memory_space<vmem>>, vector<1x8x8x4xf32>
    %28 = vector.shape_cast %27 : vector<1x8x8x4xf32> to vector<8x8x4xf32>
    %29 = vector.shape_cast %26 : vector<8x8x4xf32> to vector<1x8x8x4xf32>
    tpu.vector_store %arg22[%c0_21, %c1_22, %c1_23, %c0_24], %29 {strides = array<i32>} : memref<4x9x9x4xf32, #tpu.memory_space<vmem>>, vector<1x8x8x4xf32>,
    %cst_25 = arith.constant 0.000000e+00 : f32
    %30 = vector.broadcast %cst_25 : f32 to vector<64x8xf32>
    %c0_26 = arith.constant 0 : index
    %c0_27 = arith.constant 0 : index
    %c0_28 = arith.constant 0 : index
    %c0_29 = arith.constant 0 : index
    %31 = vector.load %arg22[%c0_26, %c0_27, %c0_28, %c0_29] : memref<4x9x9x4xf32, #tpu.memory_space<vmem>>, vector<1x8x8x4xf32>
    %32 = vector.shape_cast %31 : vector<1x8x8x4xf32> to vector<8x8x4xf32>
    %33 = vector.shape_cast %32 : vector<8x8x4xf32> to vector<64x4xf32>
    %34 = arith.truncf %33 : vector<64x4xf32> to vector<64x4xbf16>
    %c0_30 = arith.constant 0 : index
    %c0_31 = arith.constant 0 : index
    %c0_32 = arith.constant 0 : index
    %35 = vector.load %arg4[%c0_30, %c0_31, %c0_32] : memref<9x4x8xbf16, #tpu.memory_space<vmem>>, vector<1x4x8xbf16>
    %36 = vector.shape_cast %35 : vector<1x4x8xbf16> to vector<4x8xbf16>
    %cst_33 = arith.constant dense<0.000000e+00> : vector<64x8xf32>
    %37 = tpu.matmul %34, %36, %cst_33 {dimension_numbers = #tpu.dot_dimension_numbers<[1], [0], [0], [1], [0, 0, 1, 1], [], []>} : vector<64x4xbf16>, vector<4x8xbf16>, vector<64x8xf32> -> vector<64x8xf32>
    %38 = arith.addf %30, %37 : vector<64x8xf32>
    %c1_34 = arith.constant 1 : index
    %c0_35 = arith.constant 0 : index
    %c0_36 = arith.constant 0 : index
    %c0_37 = arith.constant 0 : index
    %39 = vector.load %arg22[%c1_34, %c0_35, %c0_36, %c0_37] : memref<4x9x9x4xf32, #tpu.memory_space<vmem>>, vector<1x8x8x4xf32>
    %40 = vector.shape_cast %39 : vector<1x8x8x4xf32> to vector<8x8x4xf32>
    %41 = vector.shape_cast %40 : vector<8x8x4xf32> to vector<64x4xf32>
    %42 = arith.truncf %41 : vector<64x4xf32> to vector<64x4xbf16>
    %c1_38 = arith.constant 1 : index
    %c0_39 = arith.constant 0 : index
    %c0_40 = arith.constant 0 : index
    %43 = vector.load %arg4[%c1_38, %c0_39, %c0_40] : memref<9x4x8xbf16, #tpu.memory_space<vmem>>, vector<1x4x8xbf16>
    %44 = vector.shape_cast %43 : vector<1x4x8xbf16> to vector<4x8xbf16>
    %cst_41 = arith.constant dense<0.000000e+00> : vector<64x8xf32>
    %45 = tpu.matmul %42, %44, %cst_41 {dimension_numbers = #tpu.dot_dimension_numbers<[1], [0], [0], [1], [0, 0, 1, 1], [], []>} : vector<64x4xbf16>, vector<4x8xbf16>, vector<64x8xf32> -> vector<64x8xf32>
    %46 = arith.addf %38, %45 : vector<64x8xf32>
    %c0_42 = arith.constant 0 : index
    %c0_43 = arith.constant 0 : index
    %c1_44 = arith.constant 1 : index
    %c0_45 = arith.constant 0 : index
    %47 = vector.load %arg22[%c0_42, %c0_43, %c1_44, %c0_45] : memref<4x9x9x4xf32, #tpu.memory_space<vmem>>, vector<1x8x8x4xf32>
    %48 = vector.shape_cast %47 : vector<1x8x8x4xf32> to vector<8x8x4xf32>
    %49 = vector.shape_cast %48 : vector<8x8x4xf32> to vector<64x4xf32>
    %50 = arith.truncf %49 : vector<64x4xf32> to vector<64x4xbf16>
    %c2_46 = arith.constant 2 : index
    %c0_47 = arith.constant 0 : index
    %c0_48 = arith.constant 0 : index
    %51 = vector.load %arg4[%c2_46, %c0_47, %c0_48] : memref<9x4x8xbf16, #tpu.memory_space<vmem>>, vector<1x4x8xbf16>
    %52 = vector.shape_cast %51 : vector<1x4x8xbf16> to vector<4x8xbf16>
    %cst_49 = arith.constant dense<0.000000e+00> : vector<64x8xf32>
    %53 = tpu.matmul %50, %52, %cst_49 {dimension_numbers = #tpu.dot_dimension_numbers<[1], [0], [0], [1], [0, 0, 1, 1], [], []>} : vector<64x4xbf16>, vector<4x8xbf16>, vector<64x8xf32> -> vector<64x8xf32>
    %54 = arith.addf %46, %53 : vector<64x8xf32>
    %c2_50 = arith.constant 2 : index
    %c0_51 = arith.constant 0 : index
    %c0_52 = arith.constant 0 : index
    %c0_53 = arith.constant 0 : index
    %55 = vector.load %arg22[%c2_50, %c0_51, %c0_52, %c0_53] : memref<4x9x9x4xf32, #tpu.memory_space<vmem>>, vector<1x8x8x4xf32>
    %56 = vector.shape_cast %55 : vector<1x8x8x4xf32> to vector<8x8x4xf32>
    %57 = vector.shape_cast %56 : vector<8x8x4xf32> to vector<64x4xf32>
    %58 = arith.truncf %57 : vector<64x4xf32> to vector<64x4xbf16>
    %c3_54 = arith.constant 3 : index
    %c0_55 = arith.constant 0 : index
    %c0_56 = arith.constant 0 : index
    %59 = vector.load %arg4[%c3_54, %c0_55, %c0_56] : memref<9x4x8xbf16, #tpu.memory_space<vmem>>, vector<1x4x8xbf16>
    %60 = vector.shape_cast %59 : vector<1x4x8xbf16> to vector<4x8xbf16>
    %cst_57 = arith.constant dense<0.000000e+00> : vector<64x8xf32>
    %61 = tpu.matmul %58, %60, %cst_57 {dimension_numbers = #tpu.dot_dimension_numbers<[1], [0], [0], [1], [0, 0, 1, 1], [], []>} : vector<64x4xbf16>, vector<4x8xbf16>, vector<64x8xf32> -> vector<64x8xf32>
    %62 = arith.addf %54, %61 : vector<64x8xf32>
    %c3_58 = arith.constant 3 : index
    %c0_59 = arith.constant 0 : index
    %c0_60 = arith.constant 0 : index
    %c0_61 = arith.constant 0 : index
    %63 = vector.load %arg22[%c3_58, %c0_59, %c0_60, %c0_61] : memref<4x9x9x4xf32, #tpu.memory_space<vmem>>, vector<1x8x8x4xf32>
    %64 = vector.shape_cast %63 : vector<1x8x8x4xf32> to vector<8x8x4xf32>
    %65 = vector.shape_cast %64 : vector<8x8x4xf32> to vector<64x4xf32>
    %66 = arith.truncf %65 : vector<64x4xf32> to vector<64x4xbf16>
    %c4 = arith.constant 4 : index
    %c0_62 = arith.constant 0 : index
    %c0_63 = arith.constant 0 : index
    %67 = vector.load %arg4[%c4, %c0_62, %c0_63] : memref<9x4x8xbf16, #tpu.memory_space<vmem>>, vector<1x4x8xbf16>
    %68 = vector.shape_cast %67 : vector<1x4x8xbf16> to vector<4x8xbf16>
    %cst_64 = arith.constant dense<0.000000e+00> : vector<64x8xf32>
    %69 = tpu.matmul %66, %68, %cst_64 {dimension_numbers = #tpu.dot_dimension_numbers<[1], [0], [0], [1], [0, 0, 1, 1], [], []>} : vector<64x4xbf16>, vector<4x8xbf16>, vector<64x8xf32> -> vector<64x8xf32>
    %70 = arith.addf %62, %69 : vector<64x8xf32>
    %c2_65 = arith.constant 2 : index
    %c0_66 = arith.constant 0 : index
    %c1_67 = arith.constant 1 : index
    %c0_68 = arith.constant 0 : index
    %71 = vector.load %arg22[%c2_65, %c0_66, %c1_67, %c0_68] : memref<4x9x9x4xf32, #tpu.memory_space<vmem>>, vector<1x8x8x4xf32>
    %72 = vector.shape_cast %71 : vector<1x8x8x4xf32> to vector<8x8x4xf32>
    %73 = vector.shape_cast %72 : vector<8x8x4xf32> to vector<64x4xf32>
    %74 = arith.truncf %73 : vector<64x4xf32> to vector<64x4xbf16>
    %c5 = arith.constant 5 : index
    %c0_69 = arith.constant 0 : index
    %c0_70 = arith.constant 0 : index
    %75 = vector.load %arg4[%c5, %c0_69, %c0_70] : memref<9x4x8xbf16, #tpu.memory_space<vmem>>, vector<1x4x8xbf16>
    %76 = vector.shape_cast %75 : vector<1x4x8xbf16> to vector<4x8xbf16>
    %cst_71 = arith.constant dense<0.000000e+00> : vector<64x8xf32>
    %77 = tpu.matmul %74, %76, %cst_71 {dimension_numbers = #tpu.dot_dimension_numbers<[1], [0], [0], [1], [0, 0, 1, 1], [], []>} : vector<64x4xbf16>, vector<4x8xbf16>, vector<64x8xf32> -> vector<64x8xf32>
    %78 = arith.addf %70, %77 : vector<64x8xf32>
    %c0_72 = arith.constant 0 : index
    %c1_73 = arith.constant 1 : index
    %c0_74 = arith.constant 0 : index
    %c0_75 = arith.constant 0 : index
    %79 = vector.load %arg22[%c0_72, %c1_73, %c0_74, %c0_75] : memref<4x9x9x4xf32, #tpu.memory_space<vmem>>, vector<1x8x8x4xf32>
    %80 = vector.shape_cast %79 : vector<1x8x8x4xf32> to vector<8x8x4xf32>
    %81 = vector.shape_cast %80 : vector<8x8x4xf32> to vector<64x4xf32>
    %82 = arith.truncf %81 : vector<64x4xf32> to vector<64x4xbf16>
    %c6 = arith.constant 6 : index
    %c0_76 = arith.constant 0 : index
    %c0_77 = arith.constant 0 : index
    %83 = vector.load %arg4[%c6, %c0_76, %c0_77] : memref<9x4x8xbf16, #tpu.memory_space<vmem>>, vector<1x4x8xbf16>
    %84 = vector.shape_cast %83 : vector<1x4x8xbf16> to vector<4x8xbf16>
    %cst_78 = arith.constant dense<0.000000e+00> : vector<64x8xf32>
    %85 = tpu.matmul %82, %84, %cst_78 {dimension_numbers = #tpu.dot_dimension_numbers<[1], [0], [0], [1], [0, 0, 1, 1], [], []>} : vector<64x4xbf16>, vector<4x8xbf16>, vector<64x8xf32> -> vector<64x8xf32>
    %86 = arith.addf %78, %85 : vector<64x8xf32>
    %c1_79 = arith.constant 1 : index
    %c1_80 = arith.constant 1 : index
    %c0_81 = arith.constant 0 : index
    %c0_82 = arith.constant 0 : index
    %87 = vector.load %arg22[%c1_79, %c1_80, %c0_81, %c0_82] : memref<4x9x9x4xf32, #tpu.memory_space<vmem>>, vector<1x8x8x4xf32>
    %88 = vector.shape_cast %87 : vector<1x8x8x4xf32> to vector<8x8x4xf32>
    %89 = vector.shape_cast %88 : vector<8x8x4xf32> to vector<64x4xf32>
    %90 = arith.truncf %89 : vector<64x4xf32> to vector<64x4xbf16>
    %c7 = arith.constant 7 : index
    %c0_83 = arith.constant 0 : index
    %c0_84 = arith.constant 0 : index
    %91 = vector.load %arg4[%c7, %c0_83, %c0_84] : memref<9x4x8xbf16, #tpu.memory_space<vmem>>, vector<1x4x8xbf16>
    %92 = vector.shape_cast %91 : vector<1x4x8xbf16> to vector<4x8xbf16>
    %cst_85 = arith.constant dense<0.000000e+00> : vector<64x8xf32>
    %93 = tpu.matmul %90, %92, %cst_85 {dimension_numbers = #tpu.dot_dimension_numbers<[1], [0], [0], [1], [0, 0, 1, 1], [], []>} : vector<64x4xbf16>, vector<4x8xbf16>, vector<64x8xf32> -> vector<64x8xf32>
    %94 = arith.addf %86, %93 : vector<64x8xf32>
    %c0_86 = arith.constant 0 : index
    %c1_87 = arith.constant 1 : index
    %c1_88 = arith.constant 1 : index
    %c0_89 = arith.constant 0 : index
    %95 = vector.load %arg22[%c0_86, %c1_87, %c1_88, %c0_89] : memref<4x9x9x4xf32, #tpu.memory_space<vmem>>, vector<1x8x8x4xf32>
    %96 = vector.shape_cast %95 : vector<1x8x8x4xf32> to vector<8x8x4xf32>
    %97 = vector.shape_cast %96 : vector<8x8x4xf32> to vector<64x4xf32>
    %98 = arith.truncf %97 : vector<64x4xf32> to vector<64x4xbf16>
    %c8 = arith.constant 8 : index
    %c0_90 = arith.constant 0 : index
    %c0_91 = arith.constant 0 : index
    %99 = vector.load %arg4[%c8, %c0_90, %c0_91] : memref<9x4x8xbf16, #tpu.memory_space<vmem>>, vector<1x4x8xbf16>
    %100 = vector.shape_cast %99 : vector<1x4x8xbf16> to vector<4x8xbf16>
    %cst_92 = arith.constant dense<0.000000e+00> : vector<64x8xf32>
    %101 = tpu.matmul %98, %100, %cst_92 {dimension_numbers = #tpu.dot_dimension_numbers<[1], [0], [0], [1], [0, 0, 1, 1], [], []>} : vector<64x4xbf16>, vector<4x8xbf16>, vector<64x8xf32> -> vector<64x8xf32>
    %102 = arith.addf %94, %101 : vector<64x8xf32>
    %103 = vector.extract_strided_slice %11 {offsets = [0, 0, 0], sizes = [8, 8, 4], strides = [1, 1, 1]} : vector<32x8x4xf32> to vector<8x8x4xf32>
    %104 = vector.shape_cast %103 : vector<8x8x4xf32> to vector<64x4xf32>
    %105 = arith.truncf %104 : vector<64x4xf32> to vector<64x4xbf16>
    %c0_93 = arith.constant 0 : index
    %c0_94 = arith.constant 0 : index
    %106 = vector.load %arg5[%c0_93, %c0_94] : memref<4x8xbf16, #tpu.memory_space<vmem>>, vector<4x8xbf16>
    %cst_95 = arith.constant dense<0.000000e+00> : vector<64x8xf32>
    %107 = tpu.matmul %105, %106, %cst_95 {dimension_numbers = #tpu.dot_dimension_numbers<[1], [0], [0], [1], [0, 0, 1, 1], [], []>} : vector<64x4xbf16>, vector<4x8xbf16>, vector<64x8xf32> -> vector<64x8xf32>
    %c0_96 = arith.constant 0 : index
    %c0_97 = arith.constant 0 : index
    %108 = vector.load %arg6[%c0_96, %c0_97] : memref<1x8xf32, #tpu.memory_space<vmem>>, vector<1x8xf32>
    %109 = vector.broadcast %108 : vector<1x8xf32> to vector<64x8xf32>
    %110 = arith.mulf %102, %109 : vector<64x8xf32>
    %c0_98 = arith.constant 0 : index
    %c0_99 = arith.constant 0 : index
    %111 = vector.load %arg7[%c0_98, %c0_99] : memref<1x8xf32, #tpu.memory_space<vmem>>, vector<1x8xf32>
    %112 = vector.broadcast %111 : vector<1x8xf32> to vector<64x8xf32>
    %113 = arith.addf %110, %112 : vector<64x8xf32>
    %cst_100 = arith.constant 0.000000e+00 : f32
    %114 = vector.broadcast %cst_100 : f32 to vector<64x8xf32>
    %115 = arith.maximumf %113, %114 : vector<64x8xf32>
    %cst_101 = arith.constant 0.000000e+00 : f32
    %116 = vector.broadcast %cst_101 : f32 to vector<1x10x10x8xf32>
    %c0_102 = arith.constant 0 : index
    %c0_103 = arith.constant 0 : index
    %c0_104 = arith.constant 0 : index
    %c0_105 = arith.constant 0 : index
    %117 = vector.load %arg23[%c0_102, %c0_103, %c0_104, %c0_105] : memref<1x10x10x8xf32, #tpu.memory_space<vmem>>, vector<1x10x10x8xf32>
    tpu.vector_store %arg23[%c0_102, %c0_103, %c0_104, %c0_105], %116 {strides = array<i32>} : memref<1x10x10x8xf32, #tpu.memory_space<vmem>>, vector<1x10x10x8xf32>,
    %118 = vector.extract_strided_slice %115 {offsets = [0, 0], sizes = [8, 8], strides = [1, 1]} : vector<64x8xf32> to vector<8x8xf32>
    %c0_106 = arith.constant 0 : index
    %c1_107 = arith.constant 1 : index
    %c1_108 = arith.constant 1 : index
    %c0_109 = arith.constant 0 : index
    %119 = vector.load %arg23[%c0_106, %c1_107, %c1_108, %c0_109] : memref<1x10x10x8xf32, #tpu.memory_space<vmem>>, vector<1x1x8x8xf32>
    %120 = vector.shape_cast %119 : vector<1x1x8x8xf32> to vector<8x8xf32>
    %121 = vector.shape_cast %118 : vector<8x8xf32> to vector<1x1x8x8xf32>
    tpu.vector_store %arg23[%c0_106, %c1_107, %c1_108, %c0_109], %121 {strides = array<i32>} : memref<1x10x10x8xf32, #tpu.memory_space<vmem>>, vector<1x1x8x8xf32>,
    %122 = vector.extract_strided_slice %115 {offsets = [8, 0], sizes = [8, 8], strides = [1, 1]} : vector<64x8xf32> to vector<8x8xf32>
    %c0_110 = arith.constant 0 : index
    %c2_111 = arith.constant 2 : index
    %c1_112 = arith.constant 1 : index
    %c0_113 = arith.constant 0 : index
    %123 = vector.load %arg23[%c0_110, %c2_111, %c1_112, %c0_113] : memref<1x10x10x8xf32, #tpu.memory_space<vmem>>, vector<1x1x8x8xf32>
    %124 = vector.shape_cast %123 : vector<1x1x8x8xf32> to vector<8x8xf32>
    %125 = vector.shape_cast %122 : vector<8x8xf32> to vector<1x1x8x8xf32>
    tpu.vector_store %arg23[%c0_110, %c2_111, %c1_112, %c0_113], %125 {strides = array<i32>} : memref<1x10x10x8xf32, #tpu.memory_space<vmem>>, vector<1x1x8x8xf32>,
    %126 = vector.extract_strided_slice %115 {offsets = [16, 0], sizes = [8, 8], strides = [1, 1]} : vector<64x8xf32> to vector<8x8xf32>
    %c0_114 = arith.constant 0 : index
    %c3_115 = arith.constant 3 : index
    %c1_116 = arith.constant 1 : index
    %c0_117 = arith.constant 0 : index
    %127 = vector.load %arg23[%c0_114, %c3_115, %c1_116, %c0_117] : memref<1x10x10x8xf32, #tpu.memory_space<vmem>>, vector<1x1x8x8xf32>
    %128 = vector.shape_cast %127 : vector<1x1x8x8xf32> to vector<8x8xf32>
    %129 = vector.shape_cast %126 : vector<8x8xf32> to vector<1x1x8x8xf32>
    tpu.vector_store %arg23[%c0_114, %c3_115, %c1_116, %c0_117], %129 {strides = array<i32>} : memref<1x10x10x8xf32, #tpu.memory_space<vmem>>, vector<1x1x8x8xf32>,
    %130 = vector.extract_strided_slice %115 {offsets = [24, 0], sizes = [8, 8], strides = [1, 1]} : vector<64x8xf32> to vector<8x8xf32>
    %c0_118 = arith.constant 0 : index
    %c4_119 = arith.constant 4 : index
    %c1_120 = arith.constant 1 : index
    %c0_121 = arith.constant 0 : index
    %131 = vector.load %arg23[%c0_118, %c4_119, %c1_120, %c0_121] : memref<1x10x10x8xf32, #tpu.memory_space<vmem>>, vector<1x1x8x8xf32>
    %132 = vector.shape_cast %131 : vector<1x1x8x8xf32> to vector<8x8xf32>
    %133 = vector.shape_cast %130 : vector<8x8xf32> to vector<1x1x8x8xf32>
    tpu.vector_store %arg23[%c0_118, %c4_119, %c1_120, %c0_121], %133 {strides = array<i32>} : memref<1x10x10x8xf32, #tpu.memory_space<vmem>>, vector<1x1x8x8xf32>,
    %134 = vector.extract_strided_slice %115 {offsets = [32, 0], sizes = [8, 8], strides = [1, 1]} : vector<64x8xf32> to vector<8x8xf32>
    %c0_122 = arith.constant 0 : index
    %c5_123 = arith.constant 5 : index
    %c1_124 = arith.constant 1 : index
    %c0_125 = arith.constant 0 : index
    %135 = vector.load %arg23[%c0_122, %c5_123, %c1_124, %c0_125] : memref<1x10x10x8xf32, #tpu.memory_space<vmem>>, vector<1x1x8x8xf32>
    %136 = vector.shape_cast %135 : vector<1x1x8x8xf32> to vector<8x8xf32>
    %137 = vector.shape_cast %134 : vector<8x8xf32> to vector<1x1x8x8xf32>
    tpu.vector_store %arg23[%c0_122, %c5_123, %c1_124, %c0_125], %137 {strides = array<i32>} : memref<1x10x10x8xf32, #tpu.memory_space<vmem>>, vector<1x1x8x8xf32>,
    %138 = vector.extract_strided_slice %115 {offsets = [40, 0], sizes = [8, 8], strides = [1, 1]} : vector<64x8xf32> to vector<8x8xf32>
    %c0_126 = arith.constant 0 : index
    %c6_127 = arith.constant 6 : index
    %c1_128 = arith.constant 1 : index
    %c0_129 = arith.constant 0 : index
    %139 = vector.load %arg23[%c0_126, %c6_127, %c1_128, %c0_129] : memref<1x10x10x8xf32, #tpu.memory_space<vmem>>, vector<1x1x8x8xf32>
    %140 = vector.shape_cast %139 : vector<1x1x8x8xf32> to vector<8x8xf32>
    %141 = vector.shape_cast %138 : vector<8x8xf32> to vector<1x1x8x8xf32>
    tpu.vector_store %arg23[%c0_126, %c6_127, %c1_128, %c0_129], %141 {strides = array<i32>} : memref<1x10x10x8xf32, #tpu.memory_space<vmem>>, vector<1x1x8x8xf32>,
    %142 = vector.extract_strided_slice %115 {offsets = [48, 0], sizes = [8, 8], strides = [1, 1]} : vector<64x8xf32> to vector<8x8xf32>
    %c0_130 = arith.constant 0 : index
    %c7_131 = arith.constant 7 : index
    %c1_132 = arith.constant 1 : index
    %c0_133 = arith.constant 0 : index
    %143 = vector.load %arg23[%c0_130, %c7_131, %c1_132, %c0_133] : memref<1x10x10x8xf32, #tpu.memory_space<vmem>>, vector<1x1x8x8xf32>
    %144 = vector.shape_cast %143 : vector<1x1x8x8xf32> to vector<8x8xf32>
    %145 = vector.shape_cast %142 : vector<8x8xf32> to vector<1x1x8x8xf32>
    tpu.vector_store %arg23[%c0_130, %c7_131, %c1_132, %c0_133], %145 {strides = array<i32>} : memref<1x10x10x8xf32, #tpu.memory_space<vmem>>, vector<1x1x8x8xf32>,
    %146 = vector.extract_strided_slice %115 {offsets = [56, 0], sizes = [8, 8], strides = [1, 1]} : vector<64x8xf32> to vector<8x8xf32>
    %c0_134 = arith.constant 0 : index
    %c8_135 = arith.constant 8 : index
    %c1_136 = arith.constant 1 : index
    %c0_137 = arith.constant 0 : index
    %147 = vector.load %arg23[%c0_134, %c8_135, %c1_136, %c0_137] : memref<1x10x10x8xf32, #tpu.memory_space<vmem>>, vector<1x1x8x8xf32>
    %148 = vector.shape_cast %147 : vector<1x1x8x8xf32> to vector<8x8xf32>
    %149 = vector.shape_cast %146 : vector<8x8xf32> to vector<1x1x8x8xf32>
    tpu.vector_store %arg23[%c0_134, %c8_135, %c1_136, %c0_137], %149 {strides = array<i32>} : memref<1x10x10x8xf32, #tpu.memory_space<vmem>>, vector<1x1x8x8xf32>,
    %cst_138 = arith.constant 0.000000e+00 : f32
    %150 = vector.broadcast %cst_138 : f32 to vector<64x8xf32>
    %c0_139 = arith.constant 0 : index
    %c0_140 = arith.constant 0 : index
    %c0_141 = arith.constant 0 : index
    %c0_142 = arith.constant 0 : index
    %151 = vector.load %arg23[%c0_139, %c0_140, %c0_141, %c0_142] : memref<1x10x10x8xf32, #tpu.memory_space<vmem>>, vector<1x8x8x8xf32>
    %152 = vector.shape_cast %151 : vector<1x8x8x8xf32> to vector<8x8x8xf32>
    %153 = vector.shape_cast %152 : vector<8x8x8xf32> to vector<64x8xf32>
    %154 = arith.truncf %153 : vector<64x8xf32> to vector<64x8xbf16>
    %c0_143 = arith.constant 0 : index
    %c0_144 = arith.constant 0 : index
    %c0_145 = arith.constant 0 : index
    %155 = vector.load %arg8[%c0_143, %c0_144, %c0_145] : memref<9x8x8xbf16, #tpu.memory_space<vmem>>, vector<1x8x8xbf16>
    %156 = vector.shape_cast %155 : vector<1x8x8xbf16> to vector<8x8xbf16>
    %cst_146 = arith.constant dense<0.000000e+00> : vector<64x8xf32>
    %157 = tpu.matmul %154, %156, %cst_146 {dimension_numbers = #tpu.dot_dimension_numbers<[1], [0], [0], [1], [0, 0, 1, 1], [], []>} : vector<64x8xbf16>, vector<8x8xbf16>, vector<64x8xf32> -> vector<64x8xf32>
    %158 = arith.addf %150, %157 : vector<64x8xf32>
    %c0_147 = arith.constant 0 : index
    %c0_148 = arith.constant 0 : index
    %c1_149 = arith.constant 1 : index
    %c0_150 = arith.constant 0 : index
    %159 = vector.load %arg23[%c0_147, %c0_148, %c1_149, %c0_150] : memref<1x10x10x8xf32, #tpu.memory_space<vmem>>, vector<1x8x8x8xf32>
    %160 = vector.shape_cast %159 : vector<1x8x8x8xf32> to vector<8x8x8xf32>
    %161 = vector.shape_cast %160 : vector<8x8x8xf32> to vector<64x8xf32>
    %162 = arith.truncf %161 : vector<64x8xf32> to vector<64x8xbf16>
    %c1_151 = arith.constant 1 : index
    %c0_152 = arith.constant 0 : index
    %c0_153 = arith.constant 0 : index
    %163 = vector.load %arg8[%c1_151, %c0_152, %c0_153] : memref<9x8x8xbf16, #tpu.memory_space<vmem>>, vector<1x8x8xbf16>
    %164 = vector.shape_cast %163 : vector<1x8x8xbf16> to vector<8x8xbf16>
    %cst_154 = arith.constant dense<0.000000e+00> : vector<64x8xf32>
    %165 = tpu.matmul %162, %164, %cst_154 {dimension_numbers = #tpu.dot_dimension_numbers<[1], [0], [0], [1], [0, 0, 1, 1], [], []>} : vector<64x8xbf16>, vector<8x8xbf16>, vector<64x8xf32> -> vector<64x8xf32>
    %166 = arith.addf %158, %165 : vector<64x8xf32>
    %c0_155 = arith.constant 0 : index
    %c0_156 = arith.constant 0 : index
    %c2_157 = arith.constant 2 : index
    %c0_158 = arith.constant 0 : index
    %167 = vector.load %arg23[%c0_155, %c0_156, %c2_157, %c0_158] : memref<1x10x10x8xf32, #tpu.memory_space<vmem>>, vector<1x8x8x8xf32>
    %168 = vector.shape_cast %167 : vector<1x8x8x8xf32> to vector<8x8x8xf32>
    %169 = vector.shape_cast %168 : vector<8x8x8xf32> to vector<64x8xf32>
    %170 = arith.truncf %169 : vector<64x8xf32> to vector<64x8xbf16>
    %c2_159 = arith.constant 2 : index
    %c0_160 = arith.constant 0 : index
    %c0_161 = arith.constant 0 : index
    %171 = vector.load %arg8[%c2_159, %c0_160, %c0_161] : memref<9x8x8xbf16, #tpu.memory_space<vmem>>, vector<1x8x8xbf16>
    %172 = vector.shape_cast %171 : vector<1x8x8xbf16> to vector<8x8xbf16>
    %cst_162 = arith.constant dense<0.000000e+00> : vector<64x8xf32>
    %173 = tpu.matmul %170, %172, %cst_162 {dimension_numbers = #tpu.dot_dimension_numbers<[1], [0], [0], [1], [0, 0, 1, 1], [], []>} : vector<64x8xbf16>, vector<8x8xbf16>, vector<64x8xf32> -> vector<64x8xf32>
    %174 = arith.addf %166, %173 : vector<64x8xf32>
    %c0_163 = arith.constant 0 : index
    %c1_164 = arith.constant 1 : index
    %c0_165 = arith.constant 0 : index
    %c0_166 = arith.constant 0 : index
    %175 = vector.load %arg23[%c0_163, %c1_164, %c0_165, %c0_166] : memref<1x10x10x8xf32, #tpu.memory_space<vmem>>, vector<1x8x8x8xf32>
    %176 = vector.shape_cast %175 : vector<1x8x8x8xf32> to vector<8x8x8xf32>
    %177 = vector.shape_cast %176 : vector<8x8x8xf32> to vector<64x8xf32>
    %178 = arith.truncf %177 : vector<64x8xf32> to vector<64x8xbf16>
    %c3_167 = arith.constant 3 : index
    %c0_168 = arith.constant 0 : index
    %c0_169 = arith.constant 0 : index
    %179 = vector.load %arg8[%c3_167, %c0_168, %c0_169] : memref<9x8x8xbf16, #tpu.memory_space<vmem>>, vector<1x8x8xbf16>
    %180 = vector.shape_cast %179 : vector<1x8x8xbf16> to vector<8x8xbf16>
    %cst_170 = arith.constant dense<0.000000e+00> : vector<64x8xf32>
    %181 = tpu.matmul %178, %180, %cst_170 {dimension_numbers = #tpu.dot_dimension_numbers<[1], [0], [0], [1], [0, 0, 1, 1], [], []>} : vector<64x8xbf16>, vector<8x8xbf16>, vector<64x8xf32> -> vector<64x8xf32>
    %182 = arith.addf %174, %181 : vector<64x8xf32>
    %c0_171 = arith.constant 0 : index
    %c1_172 = arith.constant 1 : index
    %c1_173 = arith.constant 1 : index
    %c0_174 = arith.constant 0 : index
    %183 = vector.load %arg23[%c0_171, %c1_172, %c1_173, %c0_174] : memref<1x10x10x8xf32, #tpu.memory_space<vmem>>, vector<1x8x8x8xf32>
    %184 = vector.shape_cast %183 : vector<1x8x8x8xf32> to vector<8x8x8xf32>
    %185 = vector.shape_cast %184 : vector<8x8x8xf32> to vector<64x8xf32>
    %186 = arith.truncf %185 : vector<64x8xf32> to vector<64x8xbf16>
    %c4_175 = arith.constant 4 : index
    %c0_176 = arith.constant 0 : index
    %c0_177 = arith.constant 0 : index
    %187 = vector.load %arg8[%c4_175, %c0_176, %c0_177] : memref<9x8x8xbf16, #tpu.memory_space<vmem>>, vector<1x8x8xbf16>
    %188 = vector.shape_cast %187 : vector<1x8x8xbf16> to vector<8x8xbf16>
    %cst_178 = arith.constant dense<0.000000e+00> : vector<64x8xf32>
    %189 = tpu.matmul %186, %188, %cst_178 {dimension_numbers = #tpu.dot_dimension_numbers<[1], [0], [0], [1], [0, 0, 1, 1], [], []>} : vector<64x8xbf16>, vector<8x8xbf16>, vector<64x8xf32> -> vector<64x8xf32>
    %190 = arith.addf %182, %189 : vector<64x8xf32>
    %c0_179 = arith.constant 0 : index
    %c1_180 = arith.constant 1 : index
    %c2_181 = arith.constant 2 : index
    %c0_182 = arith.constant 0 : index
    %191 = vector.load %arg23[%c0_179, %c1_180, %c2_181, %c0_182] : memref<1x10x10x8xf32, #tpu.memory_space<vmem>>, vector<1x8x8x8xf32>
    %192 = vector.shape_cast %191 : vector<1x8x8x8xf32> to vector<8x8x8xf32>
    %193 = vector.shape_cast %192 : vector<8x8x8xf32> to vector<64x8xf32>
    %194 = arith.truncf %193 : vector<64x8xf32> to vector<64x8xbf16>
    %c5_183 = arith.constant 5 : index
    %c0_184 = arith.constant 0 : index
    %c0_185 = arith.constant 0 : index
    %195 = vector.load %arg8[%c5_183, %c0_184, %c0_185] : memref<9x8x8xbf16, #tpu.memory_space<vmem>>, vector<1x8x8xbf16>
    %196 = vector.shape_cast %195 : vector<1x8x8xbf16> to vector<8x8xbf16>
    %cst_186 = arith.constant dense<0.000000e+00> : vector<64x8xf32>
    %197 = tpu.matmul %194, %196, %cst_186 {dimension_numbers = #tpu.dot_dimension_numbers<[1], [0], [0], [1], [0, 0, 1, 1], [], []>} : vector<64x8xbf16>, vector<8x8xbf16>, vector<64x8xf32> -> vector<64x8xf32>
    %198 = arith.addf %190, %197 : vector<64x8xf32>
    %c0_187 = arith.constant 0 : index
    %c2_188 = arith.constant 2 : index
    %c0_189 = arith.constant 0 : index
    %c0_190 = arith.constant 0 : index
    %199 = vector.load %arg23[%c0_187, %c2_188, %c0_189, %c0_190] : memref<1x10x10x8xf32, #tpu.memory_space<vmem>>, vector<1x8x8x8xf32>
    %200 = vector.shape_cast %199 : vector<1x8x8x8xf32> to vector<8x8x8xf32>
    %201 = vector.shape_cast %200 : vector<8x8x8xf32> to vector<64x8xf32>
    %202 = arith.truncf %201 : vector<64x8xf32> to vector<64x8xbf16>
    %c6_191 = arith.constant 6 : index
    %c0_192 = arith.constant 0 : index
    %c0_193 = arith.constant 0 : index
    %203 = vector.load %arg8[%c6_191, %c0_192, %c0_193] : memref<9x8x8xbf16, #tpu.memory_space<vmem>>, vector<1x8x8xbf16>
    %204 = vector.shape_cast %203 : vector<1x8x8xbf16> to vector<8x8xbf16>
    %cst_194 = arith.constant dense<0.000000e+00> : vector<64x8xf32>
    %205 = tpu.matmul %202, %204, %cst_194 {dimension_numbers = #tpu.dot_dimension_numbers<[1], [0], [0], [1], [0, 0, 1, 1], [], []>} : vector<64x8xbf16>, vector<8x8xbf16>, vector<64x8xf32> -> vector<64x8xf32>
    %206 = arith.addf %198, %205 : vector<64x8xf32>
    %c0_195 = arith.constant 0 : index
    %c2_196 = arith.constant 2 : index
    %c1_197 = arith.constant 1 : index
    %c0_198 = arith.constant 0 : index
    %207 = vector.load %arg23[%c0_195, %c2_196, %c1_197, %c0_198] : memref<1x10x10x8xf32, #tpu.memory_space<vmem>>, vector<1x8x8x8xf32>
    %208 = vector.shape_cast %207 : vector<1x8x8x8xf32> to vector<8x8x8xf32>
    %209 = vector.shape_cast %208 : vector<8x8x8xf32> to vector<64x8xf32>
    %210 = arith.truncf %209 : vector<64x8xf32> to vector<64x8xbf16>
    %c7_199 = arith.constant 7 : index
    %c0_200 = arith.constant 0 : index
    %c0_201 = arith.constant 0 : index
    %211 = vector.load %arg8[%c7_199, %c0_200, %c0_201] : memref<9x8x8xbf16, #tpu.memory_space<vmem>>, vector<1x8x8xbf16>
    %212 = vector.shape_cast %211 : vector<1x8x8xbf16> to vector<8x8xbf16>
    %cst_202 = arith.constant dense<0.000000e+00> : vector<64x8xf32>
    %213 = tpu.matmul %210, %212, %cst_202 {dimension_numbers = #tpu.dot_dimension_numbers<[1], [0], [0], [1], [0, 0, 1, 1], [], []>} : vector<64x8xbf16>, vector<8x8xbf16>, vector<64x8xf32> -> vector<64x8xf32>
    %214 = arith.addf %206, %213 : vector<64x8xf32>
    %c0_203 = arith.constant 0 : index
    %c2_204 = arith.constant 2 : index
    %c2_205 = arith.constant 2 : index
    %c0_206 = arith.constant 0 : index
    %215 = vector.load %arg23[%c0_203, %c2_204, %c2_205, %c0_206] : memref<1x10x10x8xf32, #tpu.memory_space<vmem>>, vector<1x8x8x8xf32>
    %216 = vector.shape_cast %215 : vector<1x8x8x8xf32> to vector<8x8x8xf32>
    %217 = vector.shape_cast %216 : vector<8x8x8xf32> to vector<64x8xf32>
    %218 = arith.truncf %217 : vector<64x8xf32> to vector<64x8xbf16>
    %c8_207 = arith.constant 8 : index
    %c0_208 = arith.constant 0 : index
    %c0_209 = arith.constant 0 : index
    %219 = vector.load %arg8[%c8_207, %c0_208, %c0_209] : memref<9x8x8xbf16, #tpu.memory_space<vmem>>, vector<1x8x8xbf16>
    %220 = vector.shape_cast %219 : vector<1x8x8xbf16> to vector<8x8xbf16>
    %cst_210 = arith.constant dense<0.000000e+00> : vector<64x8xf32>
    %221 = tpu.matmul %218, %220, %cst_210 {dimension_numbers = #tpu.dot_dimension_numbers<[1], [0], [0], [1], [0, 0, 1, 1], [], []>} : vector<64x8xbf16>, vector<8x8xbf16>, vector<64x8xf32> -> vector<64x8xf32>
    %222 = arith.addf %214, %221 : vector<64x8xf32>
    %cst_211 = arith.constant dense<0.000000e+00> : vector<8xf32>
    %223 = vector.multi_reduction <add>, %222, %cst_211 [0] : vector<64x8xf32> to vector<8xf32>
    %224 = vector.shape_cast %223 : vector<8xf32> to vector<1x8xf32>
    %cst_212 = arith.constant 6.400000e+01 : f32
    %225 = vector.broadcast %cst_212 : f32 to vector<1x8xf32>
    %226 = arith.divf %224, %225 : vector<1x8xf32>
    %c0_213 = arith.constant 0 : index
    %c0_214 = arith.constant 0 : index
    %c0_215 = arith.constant 0 : index
    %227 = vector.load %arg17[%c0_213, %c0_214, %c0_215] : memref<1x1x8xf32, #tpu.memory_space<vmem>>, vector<1x1x8xf32>
    %228 = vector.shape_cast %227 : vector<1x1x8xf32> to vector<1x8xf32>
    %c0_216 = arith.constant 0 : index
    %c0_217 = arith.constant 0 : index
    %c0_218 = arith.constant 0 : index
    %229 = vector.load %arg18[%c0_216, %c0_217, %c0_218] : memref<1x1x8xf32, #tpu.memory_space<vmem>>, vector<1x1x8xf32>
    %230 = vector.shape_cast %229 : vector<1x1x8xf32> to vector<1x8xf32>
    %c0_219 = arith.constant 0 : index
    %c0_220 = arith.constant 0 : index
    %231 = vector.load %arg9[%c0_219, %c0_220] : memref<8x2xf32, #tpu.memory_space<vmem>>, vector<8x2xf32>
    %c0_221 = arith.constant 0 : index
    %c0_222 = arith.constant 0 : index
    %232 = vector.load %arg10[%c0_221, %c0_222] : memref<1x2xf32, #tpu.memory_space<vmem>>, vector<1x2xf32>
    %c0_223 = arith.constant 0 : index
    %c0_224 = arith.constant 0 : index
    %233 = vector.load %arg11[%c0_223, %c0_224] : memref<2x32xf32, #tpu.memory_space<vmem>>, vector<2x32xf32>
    %c0_225 = arith.constant 0 : index
    %c0_226 = arith.constant 0 : index
    %234 = vector.load %arg12[%c0_225, %c0_226] : memref<1x32xf32, #tpu.memory_space<vmem>>, vector<1x32xf32>
    %cst_227 = arith.constant dense<0.000000e+00> : vector<1x2xf32>
    %235 = tpu.matmul %226, %231, %cst_227 {dimension_numbers = #tpu.dot_dimension_numbers<[1], [0], [0], [1], [0, 0, 1, 1], [], []>} : vector<1x8xf32>, vector<8x2xf32>, vector<1x2xf32> -> vector<1x2xf32>
    %236 = arith.addf %235, %232 : vector<1x2xf32>
    %cst_228 = arith.constant 0.000000e+00 : f32
    %237 = vector.broadcast %cst_228 : f32 to vector<1x2xf32>
    %238 = arith.maximumf %236, %237 : vector<1x2xf32>
    %cst_229 = arith.constant dense<0.000000e+00> : vector<1x32xf32>
    %239 = tpu.matmul %238, %233, %cst_229 {dimension_numbers = #tpu.dot_dimension_numbers<[1], [0], [0], [1], [0, 0, 1, 1], [], []>} : vector<1x2xf32>, vector<2x32xf32>, vector<1x32xf32> -> vector<1x32xf32>
    %240 = arith.addf %239, %234 : vector<1x32xf32>
    %c0_230 = arith.constant 0 : index
    %c0_231 = arith.constant 0 : index
    %241 = vector.load %arg13[%c0_230, %c0_231] : memref<8x2xf32, #tpu.memory_space<vmem>>, vector<8x2xf32>
    %c0_232 = arith.constant 0 : index
    %c0_233 = arith.constant 0 : index
    %242 = vector.load %arg14[%c0_232, %c0_233] : memref<1x2xf32, #tpu.memory_space<vmem>>, vector<1x2xf32>
    %c0_234 = arith.constant 0 : index
    %c0_235 = arith.constant 0 : index
    %243 = vector.load %arg15[%c0_234, %c0_235] : memref<2x32xf32, #tpu.memory_space<vmem>>, vector<2x32xf32>
    %c0_236 = arith.constant 0 : index
    %c0_237 = arith.constant 0 : index
    %244 = vector.load %arg16[%c0_236, %c0_237] : memref<1x32xf32, #tpu.memory_space<vmem>>, vector<1x32xf32>
    %cst_238 = arith.constant dense<0.000000e+00> : vector<1x2xf32>
    %245 = tpu.matmul %228, %241, %cst_238 {dimension_numbers = #tpu.dot_dimension_numbers<[1], [0], [0], [1], [0, 0, 1, 1], [], []>} : vector<1x8xf32>, vector<8x2xf32>, vector<1x2xf32> -> vector<1x2xf32>
    %246 = arith.addf %245, %242 : vector<1x2xf32>
    %cst_239 = arith.constant 0.000000e+00 : f32
    %247 = vector.broadcast %cst_239 : f32 to vector<1x2xf32>
    %248 = arith.maximumf %246, %247 : vector<1x2xf32>
    %cst_240 = arith.constant dense<0.000000e+00> : vector<1x32xf32>
    %249 = tpu.matmul %248, %243, %cst_240 {dimension_numbers = #tpu.dot_dimension_numbers<[1], [0], [0], [1], [0, 0, 1, 1], [], []>} : vector<1x2xf32>, vector<2x32xf32>, vector<1x32xf32> -> vector<1x32xf32>
    %250 = arith.addf %249, %244 : vector<1x32xf32>
    %251 = arith.addf %240, %250 : vector<1x32xf32>
    %252 = vector.extract_strided_slice %251 {offsets = [0, 0], sizes = [1, 8], strides = [1, 1]} : vector<1x32xf32> to vector<1x8xf32>
    %253 = arith.negf %252 : vector<1x8xf32>
    %254 = math.exp %253 : vector<1x8xf32>
    %cst_241 = arith.constant 1.000000e+00 : f32
    %255 = vector.broadcast %cst_241 : f32 to vector<1x8xf32>
    %256 = arith.addf %255, %254 : vector<1x8xf32>
    %257 = arith.divf %255, %256 : vector<1x8xf32>
    %258 = vector.extract_strided_slice %251 {offsets = [0, 8], sizes = [1, 8], strides = [1, 1]} : vector<1x32xf32> to vector<1x8xf32>
    %259 = arith.negf %258 : vector<1x8xf32>
    %260 = math.exp %259 : vector<1x8xf32>
    %cst_242 = arith.constant 1.000000e+00 : f32
    %261 = vector.broadcast %cst_242 : f32 to vector<1x8xf32>
    %262 = arith.addf %261, %260 : vector<1x8xf32>
    %263 = arith.divf %261, %262 : vector<1x8xf32>
    %264 = vector.extract_strided_slice %251 {offsets = [0, 16], sizes = [1, 8], strides = [1, 1]} : vector<1x32xf32> to vector<1x8xf32>
    %265 = math.tanh %264 : vector<1x8xf32>
    %266 = vector.extract_strided_slice %251 {offsets = [0, 24], sizes = [1, 8], strides = [1, 1]} : vector<1x32xf32> to vector<1x8xf32>
    %267 = arith.negf %266 : vector<1x8xf32>
    %268 = math.exp %267 : vector<1x8xf32>
    %cst_243 = arith.constant 1.000000e+00 : f32
    %269 = vector.broadcast %cst_243 : f32 to vector<1x8xf32>
    %270 = arith.addf %269, %268 : vector<1x8xf32>
    %271 = arith.divf %269, %270 : vector<1x8xf32>
    %272 = arith.mulf %263, %230 : vector<1x8xf32>
    %273 = arith.mulf %257, %265 : vector<1x8xf32>
    %274 = arith.addf %272, %273 : vector<1x8xf32>
    %275 = arith.negf %274 : vector<1x8xf32>
    %276 = math.exp %275 : vector<1x8xf32>
    %cst_244 = arith.constant 1.000000e+00 : f32
    %277 = vector.broadcast %cst_244 : f32 to vector<1x8xf32>
    %278 = arith.addf %277, %276 : vector<1x8xf32>
    %279 = arith.divf %277, %278 : vector<1x8xf32>
    %280 = arith.mulf %271, %279 : vector<1x8xf32>
    %281 = vector.broadcast %280 : vector<1x8xf32> to vector<64x8xf32>
    %282 = arith.mulf %222, %281 : vector<64x8xf32>
    %283 = arith.addf %282, %107 : vector<64x8xf32>
    %c0_245 = arith.constant 0 : index
    %c0_246 = arith.constant 0 : index
    %c0_247 = arith.constant 0 : index
    %284 = vector.load %arg19[%c0_245, %c0_246, %c0_247] : memref<1x64x8xf32, #tpu.memory_space<vmem>>, vector<1x64x8xf32>
    %285 = vector.shape_cast %284 : vector<1x64x8xf32> to vector<64x8xf32>
    %286 = vector.shape_cast %283 : vector<64x8xf32> to vector<1x64x8xf32>
    tpu.vector_store %arg19[%c0_245, %c0_246, %c0_247], %286 {strides = array<i32>} : memref<1x64x8xf32, #tpu.memory_space<vmem>>, vector<1x64x8xf32>,
    %c0_248 = arith.constant 0 : index
    %c0_249 = arith.constant 0 : index
    %c0_250 = arith.constant 0 : index
    %287 = vector.load %arg20[%c0_248, %c0_249, %c0_250] : memref<1x1x8xf32, #tpu.memory_space<vmem>>, vector<1x1x8xf32>
    %288 = vector.shape_cast %287 : vector<1x1x8xf32> to vector<1x8xf32>
    %289 = vector.shape_cast %280 : vector<1x8xf32> to vector<1x1x8xf32>
    tpu.vector_store %arg20[%c0_248, %c0_249, %c0_250], %289 {strides = array<i32>} : memref<1x1x8xf32, #tpu.memory_space<vmem>>, vector<1x1x8xf32>,
    %c0_251 = arith.constant 0 : index
    %c0_252 = arith.constant 0 : index
    %c0_253 = arith.constant 0 : index
    %290 = vector.load %arg21[%c0_251, %c0_252, %c0_253] : memref<1x1x8xf32, #tpu.memory_space<vmem>>, vector<1x1x8xf32>
    %291 = vector.shape_cast %290 : vector<1x1x8xf32> to vector<1x8xf32>
    %292 = vector.shape_cast %274 : vector<1x8xf32> to vector<1x1x8xf32>
    tpu.vector_store %arg21[%c0_251, %c0_252, %c0_253], %292 {strides = array<i32>} : memref<1x1x8xf32, #tpu.memory_space<vmem>>, vector<1x1x8xf32>,
    return
  }
  func.func @transform_0(%arg0: i32) -> (i32, i32, i32, i32) {
    %c0_i32 = arith.constant 0 : i32
    %c0_i32_0 = arith.constant 0 : i32
    %c0_i32_1 = arith.constant 0 : i32
    %c0_i32_2 = arith.constant 0 : i32
    return %arg0, %c0_i32, %c0_i32_0, %c0_i32_1 : i32, i32, i32, i32
  }
  func.func @transform_1(%arg0: i32) -> (i32, i32) {
    %c0_i32 = arith.constant 0 : i32
    %c0_i32_0 = arith.constant 0 : i32
    %c0_i32_1 = arith.constant 0 : i32
    return %c0_i32, %c0_i32_0 : i32, i32
  }
  func.func @transform_2(%arg0: i32) -> (i32, i32) {
    %c0_i32 = arith.constant 0 : i32
    %c0_i32_0 = arith.constant 0 : i32
    %c0_i32_1 = arith.constant 0 : i32
    return %c0_i32, %c0_i32_0 : i32, i32
  }
  func.func @transform_3(%arg0: i32) -> (i32, i32, i32) {
    %c0_i32 = arith.constant 0 : i32
    %c0_i32_0 = arith.constant 0 : i32
    %c0_i32_1 = arith.constant 0 : i32
    %c0_i32_2 = arith.constant 0 : i32
    return %c0_i32, %c0_i32_0, %c0_i32_1 : i32, i32, i32
  }
  func.func @transform_4(%arg0: i32) -> (i32, i32) {
    %c0_i32 = arith.constant 0 : i32
    %c0_i32_0 = arith.constant 0 : i32
    %c0_i32_1 = arith.constant 0 : i32
    return %c0_i32, %c0_i32_0 : i32, i32
  }
  func.func @transform_5(%arg0: i32) -> (i32, i32) {
    %c0_i32 = arith.constant 0 : i32
    %c0_i32_0 = arith.constant 0 : i32
    %c0_i32_1 = arith.constant 0 : i32
    return %c0_i32, %c0_i32_0 : i32, i32
  }
  func.func @transform_6(%arg0: i32) -> (i32, i32) {
    %c0_i32 = arith.constant 0 : i32
    %c0_i32_0 = arith.constant 0 : i32
    %c0_i32_1 = arith.constant 0 : i32
    return %c0_i32, %c0_i32_0 : i32, i32
  }
  func.func @transform_7(%arg0: i32) -> (i32, i32, i32) {
    %c0_i32 = arith.constant 0 : i32
    %c0_i32_0 = arith.constant 0 : i32
    %c0_i32_1 = arith.constant 0 : i32
    %c0_i32_2 = arith.constant 0 : i32
    return %c0_i32, %c0_i32_0, %c0_i32_1 : i32, i32, i32
  }
  func.func @transform_8(%arg0: i32) -> (i32, i32) {
    %c0_i32 = arith.constant 0 : i32
    %c0_i32_0 = arith.constant 0 : i32
    %c0_i32_1 = arith.constant 0 : i32
    return %c0_i32, %c0_i32_0 : i32, i32
  }
  func.func @transform_9(%arg0: i32) -> (i32, i32) {
    %c0_i32 = arith.constant 0 : i32
    %c0_i32_0 = arith.constant 0 : i32
    %c0_i32_1 = arith.constant 0 : i32
    return %c0_i32, %c0_i32_0 : i32, i32
  }
  func.func @transform_10(%arg0: i32) -> (i32, i32) {
    %c0_i32 = arith.constant 0 : i32
    %c0_i32_0 = arith.constant 0 : i32
    %c0_i32_1 = arith.constant 0 : i32
    return %c0_i32, %c0_i32_0 : i32, i32
  }
  func.func @transform_11(%arg0: i32) -> (i32, i32) {
    %c0_i32 = arith.constant 0 : i32
    %c0_i32_0 = arith.constant 0 : i32
    %c0_i32_1 = arith.constant 0 : i32
    return %c0_i32, %c0_i32_0 : i32, i32
  }
  func.func @transform_12(%arg0: i32) -> (i32, i32) {
    %c0_i32 = arith.constant 0 : i32
    %c0_i32_0 = arith.constant 0 : i32
    %c0_i32_1 = arith.constant 0 : i32
    return %c0_i32, %c0_i32_0 : i32, i32
  }
  func.func @transform_13(%arg0: i32) -> (i32, i32) {
    %c0_i32 = arith.constant 0 : i32
    %c0_i32_0 = arith.constant 0 : i32
    %c0_i32_1 = arith.constant 0 : i32
    return %c0_i32, %c0_i32_0 : i32, i32
  }
  func.func @transform_14(%arg0: i32) -> (i32, i32) {
    %c0_i32 = arith.constant 0 : i32
    %c0_i32_0 = arith.constant 0 : i32
    %c0_i32_1 = arith.constant 0 : i32
    return %c0_i32, %c0_i32_0 : i32, i32
  }
  func.func @transform_15(%arg0: i32) -> (i32, i32) {
    %c0_i32 = arith.constant 0 : i32
    %c0_i32_0 = arith.constant 0 : i32
    %c0_i32_1 = arith.constant 0 : i32
    return %c0_i32, %c0_i32_0 : i32, i32
  }
  func.func @transform_16(%arg0: i32) -> (i32, i32, i32) {
    %c0_i32 = arith.constant 0 : i32
    %c0_i32_0 = arith.constant 0 : i32
    %c0_i32_1 = arith.constant 0 : i32
    return %arg0, %c0_i32, %c0_i32_0 : i32, i32, i32
  }
  func.func @transform_17(%arg0: i32) -> (i32, i32, i32) {
    %c0_i32 = arith.constant 0 : i32
    %c0_i32_0 = arith.constant 0 : i32
    %c0_i32_1 = arith.constant 0 : i32
    return %arg0, %c0_i32, %c0_i32_0 : i32, i32, i32
  }
  func.func @transform_18(%arg0: i32) -> (i32, i32, i32) {
    %c0_i32 = arith.constant 0 : i32
    %c0_i32_0 = arith.constant 0 : i32
    %c0_i32_1 = arith.constant 0 : i32
    return %arg0, %c0_i32, %c0_i32_0 : i32, i32, i32
  }
  func.func @transform_19(%arg0: i32) -> (i32, i32, i32) {
    %c0_i32 = arith.constant 0 : i32
    %c0_i32_0 = arith.constant 0 : i32
    %c0_i32_1 = arith.constant 0 : i32
    return %arg0, %c0_i32, %c0_i32_0 : i32, i32, i32
  }
  func.func @transform_20(%arg0: i32) -> (i32, i32, i32) {
    %c0_i32 = arith.constant 0 : i32
    %c0_i32_0 = arith.constant 0 : i32
    %c0_i32_1 = arith.constant 0 : i32
    return %arg0, %c0_i32, %c0_i32_0 : i32, i32, i32
  }
}

</mosaic_0001>

<bundles_post_ra>
// kernel: dia_preres_unit_forward.1
= control target key start
LH: loop header
LB: loop body
LE: loop exit
PB: predicated region body
PF: predicated region fallthrough
CT: control target
= control target key end

     0   :  { %s3994_s0 = inlined_call_operand.vmem [shape: f32[2,32,8,4], index: 0, kind: input, shape index: {}]   ;;  %s3995_s1 = inlined_call_operand.vmem [shape: f32[1,4], index: 1, kind: input, shape index: {}]   ;;  %s3996_s2 = inlined_call_operand.vmem [shape: f32[1,4], index: 2, kind: input, shape index: {}]   ;;  %s3997_s3 = inlined_call_operand.vmem [shape: bf16[9,4,8], index: 3, kind: input, shape index: {}]   ;;  %s3998_s4 = inlined_call_operand.vmem [shape: bf16[4,8], index: 4, kind: input, shape index: {}]   ;;  %s3999_s5 = inlined_call_operand.vmem [shape: f32[1,8], index: 5, kind: input, shape index: {}]   ;;  %s4000_s6 = inlined_call_operand.vmem [shape: f32[1,8], index: 6, kind: input, shape index: {}]   ;;  %s4001_s7 = inlined_call_operand.vmem [shape: bf16[9,8,8], index: 7, kind: input, shape index: {}]   ;;  %s4002_s8 = inlined_call_operand.vmem [shape: f32[8,2], index: 8, kind: input, shape index: {}]   ;;  %s4003_s9 = inlined_call_operand.vmem [shape: f32[1,2], index: 9, kind: input, shape index: {}]   ;;  %s4004_s10 = inlined_call_operand.vmem [shape: f32[2,32], index: 10, kind: input, shape index: {}]   ;;  %s4005_s11 = inlined_call_operand.vmem [shape: f32[1,32], index: 11, kind: input, shape index: {}]   ;;  %s4006_s12 = inlined_call_operand.vmem [shape: f32[8,2], index: 12, kind: input, shape index: {}]   ;;  %s4007_s13 = inlined_call_operand.vmem [shape: f32[1,2], index: 13, kind: input, shape index: {}]   ;;  %s4008_s14 = inlined_call_operand.vmem [shape: f32[2,32], index: 14, kind: input, shape index: {}]   ;;  %s4009_s15 = inlined_call_operand.vmem [shape: f32[1,32], index: 15, kind: input, shape index: {}]   ;;  %s4010_s16 = inlined_call_operand.vmem [shape: f32[2,1,8], index: 16, kind: input, shape index: {}, may-alias: {16,17}]   ;;  %s4011_s17 = inlined_call_operand.vmem [shape: f32[2,1,8], index: 17, kind: input, shape index: {}, may-alias: {16,17}]   ;;  %s4012_s18 = inlined_call_operand.vmem [shape: f32[2,64,8], index: 18, kind: output, shape index: {0}]   ;;  %s4013_s19 = inlined_call_operand.hbm [shape: f32[2,1,8], index: 19, kind: output, shape index: {1}]   ;;  %s4014_s20 = inlined_call_operand.hbm [shape: f32[2,1,8], index: 20, kind: output, shape index: {2}]  }
   0x1   :  { %4023 = sst [smem:[#allocation16_spill]] %s3994_s0 }
   0x2   :  { %4024 = sst [smem:[#allocation17_spill]] %s3995_s1 }
   0x3   :  { %4025 = sst [smem:[#allocation18_spill]] %s3996_s2 }
   0x4   :  { %4026 = sst [smem:[#allocation19_spill]] %s3997_s3 }
   0x5   :  { %4027 = sst [smem:[#allocation20_spill]] %s3998_s4 }
   0x6   :  { %4028 = sst [smem:[#allocation21_spill]] %s3999_s5 }
   0x7   :  { %4029 = sst [smem:[#allocation22_spill]] %s4000_s6 }
   0x8   :  { %4030 = sst [smem:[#allocation23_spill]] %s4001_s7 }
   0x9   :  { %4031 = sst [smem:[#allocation24_spill]] %s4002_s8 }
   0xa   :  { %4032 = sst [smem:[#allocation25_spill]] %s4013_s19 }
   0xb   :  { %26 = vsyncpa [#allocation5], 0 }
   0xc   :  { %28 = vsyncpa [#allocation5 + $0x1], 0 }
   0xd   :  { %29 = vsyncpa [#allocation7], 0 }
   0xe   :  { %31 = vsyncpa [#allocation7 + $0x1], 0  ;;  %s2993_s1 = smov 0   ;;  %s2995_s22 = smov 0  }
   0xf   :  { %s2997_s23 = smov 0   ;;  %s2999_s24 = smov 0  }
  0x10 LB: > { %4033 = sst [smem:[#allocation10_spill]] %s2867_s1  ;;  %s3014_s2 = sadd.s32 4294967295, %s2879_s24   ;;  %s2879_s24 = sphi %s2999_s24, %s4054_s24   ;;  %s2875_s23 = sphi %s2997_s23, %s4056_s23   ;;  %s2871_s22 = sphi %s2995_s22, %s4058_s22   ;;  %s2867_s1 = sphi %s2993_s1, %s4057_s1  }
  0x11   : > { %4034 = sst [smem:[#allocation11_spill]] %s2875_s23  ;;  %s2605_s25 = sadd.s32 4294967294, %s2879_s24  }
  0x12   : > { %4035 = sst [smem:[#allocation12_spill]] %s2879_s24  ;;  %s3018_s3 = sadd.s32 1, %s2879_s24  }
  0x13   : > { %4036 = sst [smem:[#allocation13_spill]] %s3018_s3  ;;  %s463_s26 = sadd.s32 1, %s2875_s23 }
  0x14   : > { %s460_s27 = ssub.s32 %s2879_s24, %s3018_s3  ;;  %p473_p0 = scmp.ne.s32.totalorder %s2875_s23, %s2871_s22 }
  0x15   : > { %p461_p1 = scmp.eq.s32.totalorder %s460_s27, 0  ;;  %p474_p2 = scmp.eq.s32.totalorder %s3014_s2, 1 }
  0x16   : > { %p479_p3 = scmp.ne.s32.totalorder %s2871_s22, %s2867_s1  ;;  %p480_p4 = scmp.eq.s32.totalorder %s2605_s25, 1 }
  0x17   : > { %s3029_s28 = scalar_select %p461_p1, %s2875_s23, %s463_s26  }
  0x18   : > { %p3031_p5 = por %p474_p2, %p473_p0  ;;  %p3035_p6 = por %p480_p4, %p479_p3 }
  0x19   : > { %4037 = sst [smem:[#allocation14_spill]] %s3029_s28  ;;  %p2608_p7 = scmp.ge.s32.totalorder %s2879_s24, 1 }
  0x1a   : > { %s4039_s29 = scalar_select %p3035_p6, 1, 0 }
  0x1b   : > { %p589_p8 = scmp.lt.s32.totalorder %s2879_s24, 3 }
  0x1c   : > { %4040 = sst [smem:[#allocation15_spill]] %s4039_s29 }
  0x1d   : > { %p590_p9 = pnand %p2608_p7, %p589_p8 }
  0x1e   : > { %s4041_s21 = sld [smem:[#allocation19_spill]] (!%p590_p9)  ;;  %p661_p10 = scmp.lt.s32.totalorder (!%p590_p9), %s3014_s2, 1 }
  0x1f   : > { %593 = sbr.rel (%p590_p9) target bundleno = 1607 (0x647), region = 92  ;;  %s4042_s28 = sld [smem:[#allocation17_spill]] (!%p590_p9) }
  0x20   : > { %s4043_s27 = sld [smem:[#allocation16_spill]] (!%p590_p9)  ;;  %s2883_s24 = smov (!%p590_p9), 112  }
  0x21   : > { %s4044_s19 = sld [smem:[#allocation18_spill]] (!%p590_p9)  ;;  %s2885_s25 = smov (!%p590_p9), 120  }
  0x22   : > { %s4045_s7 = sld [smem:[#allocation23_spill]] (!%p590_p9) }
  0x23   : > { %s4046_s0 = sld [smem:[#allocation20_spill]] (!%p590_p9) }
  0x24   : > { %v2613_v0 = vld [vmem:[%s4041_s21 + $0x2] sm:$0x3]  ;;  %vm964_vm0 = vcmask 1041408   ;;  %v936_v1 = vld [vmem:[%s4041_s21] sm:$0x3]  ;;  %s3059_s30 = scalar_select %p661_p10, %s3014_s2, 1 }
  0x25   : > { %v966_v2 = vsel %vm964_vm0, %v2613_v0, 0  ;;  %v1010_v3 = vsel %vm964_vm0, %v936_v1, 0  ;;  %v2622_v4 = vld [vmem:[%s4041_s21 + $0x4] sm:$0x3]  ;;  %v2627_v5 = vld [vmem:[%s4041_s21 + $0x6] sm:$0x3] }
  0x26   : > { %975 = vmatpush.bf16.msra.mxu0 %v966_v2  ;;  %1019 = vmatpush.bf16.msra.mxu1 %v1010_v3  ;;  %v1068_v6 = vsel %vm964_vm0, %v2622_v4, 0  ;;  %v1134_v7 = vsel %vm964_vm0, %v2627_v5, 0  ;;  %vm814_vm1 = vcmask 31744   ;;  %v3064_v8 = vld [vmem:[%s4042_s28] ss:$0 sm:$0xff]  ;;  %s2715_s26 = sshll.u32 %s3059_s30, 8  ;;  %s668_s1 = scalar_lea.vmem %s4010_s16, %s3059_s30 }
  0x27   : > { %1077 = vmatpush.bf16.msra.mxu2 %v1068_v6  ;;  %1143 = vmatpush.bf16.msra.mxu3 %v1134_v7  ;;  %s3070_s29 = scalar_lea.vmem %s4043_s27, %s2715_s26  ;;  %v3075_v9 = vld [vmem:[%s4044_s19] ss:$0 sm:$0xff]  ;;  %v2881_v10 = vmov 0.0   ;;  %vm816_vm2 = vcmask 24576   ;;  %v2632_v18 = vld [vmem:[%s4041_s21 + $0x8] sm:$0x3]  ;;  %s671_s3 = scalar_lea.vmem %s4011_s17, %s3059_s30 }
  0x28   : > { %834 = vst.msk [vmem:[#allocation2 + $0x90] sm:$0xff] %vm814_vm1, %v2881_v10  ;;  %v694_v11 = vld [vmem:[%s3070_s29 + $0x80] sm:$0xff]  ;;  %v1200_v20 = vsel %vm964_vm0, %v2632_v18, 0  ;;  %v687_v25 = vld [vmem:[%s3070_s29 + $0x48] sm:$0xff]  ;;  %v696_v29 = vld [vmem:[%s3070_s29 + $0x90] sm:$0xff]  ;;  %vm1661_vm3 = vcmask 1043456  }
  0x29   : > { %836 = vst.msk [vmem:[#allocation2 + $0xa0] sm:$0xff] %vm814_vm1, %v2881_v10  ;;  %v730_v12 = vmul.f32 %v3064_v8, %v694_v11  ;;  %v702_v19 = vld [vmem:[%s3070_s29 + $0xc0] sm:$0xff]  ;;  %v695_v26 = vld [vmem:[%s3070_s29 + $0x88] sm:$0xff]  ;;  %v723_v30 = vmul.f32 %v3064_v8, %v687_v25  ;;  %v704_v35 = vld [vmem:[%s3070_s29 + $0xd0] sm:$0xff]  ;;  %v732_v38 = vmul.f32 %v3064_v8, %v696_v29  ;;  %vm1584_vm4 = vcmask 64512   ;;  %s4047_s5 = sld [smem:[#allocation21_spill]] }
  0x2a   : > { %815 = vst.msk [vmem:[#allocation2] sm:$0xff] %vm814_vm1, %v2881_v10  ;;  %1209 = vmatpush.bf16.msrb.mxu0 %v1200_v20  ;;  %v738_v21 = vmul.f32 %v3064_v8, %v702_v19  ;;  %v686_v24 = vld [vmem:[%s3070_s29 + $0x40] sm:$0xff]  ;;  %v703_v31 = vld [vmem:[%s3070_s29 + $0xc8] sm:$0xff]  ;;  %v731_v34 = vmul.f32 %v3064_v8, %v695_v26  ;;  %v688_v39 = vld [vmem:[%s3070_s29 + $0x50] sm:$0xff]  ;;  %v740_v45 = vmul.f32 %v3064_v8, %v704_v35  ;;  %vm1586_vm5 = vcmask 58368   ;;  %s4048_s6 = sld [smem:[#allocation22_spill]] }
  0x2b   : > { %v766_v13 = vadd.f32 %v3075_v9, %v730_v12  ;;  %818 = vst.msk [vmem:[#allocation2 + $0x10] sm:$0xff] %vm814_vm1, %v2881_v10  ;;  %v722_v28 = vmul.f32 %v3064_v8, %v686_v24  ;;  %v739_v42 = vmul.f32 %v3064_v8, %v703_v31  ;;  %v689_v43 = vld [vmem:[%s3070_s29 + $0x58] sm:$0xff]  ;;  %v759_v44 = vadd.f32 %v3075_v9, %v723_v30  ;;  %v698_v49 = vld [vmem:[%s3070_s29 + $0xa0] sm:$0xff]  ;;  %v691_v0 = vld [vmem:[%s3070_s29 + $0x68] sm:$0xff]  ;;  %s4049_s8 = sld [smem:[#allocation24_spill]]  ;;  %s2886_s28 = smov 16  }
  0x2c   : > { %820 = vst.msk [vmem:[#allocation2 + $0x20] sm:$0xff] %vm814_vm1, %v2881_v10  ;;  %v774_v22 = vadd.f32 %v3075_v9, %v738_v21  ;;  %v697_v46 = vld [vmem:[%s3070_s29 + $0x98] sm:$0xff]  ;;  %v767_v47 = vadd.f32 %v3075_v9, %v731_v34  ;;  %v724_v48 = vmul.f32 %v3064_v8, %v688_v39  ;;  %v768_v50 = vadd.f32 %v3075_v9, %v732_v38  ;;  %v706_v56 = vld [vmem:[%s3070_s29 + $0xe0] sm:$0xff]  ;;  %s3913_s26 = sand.u32 1, %s2871_s22  }
  0x2d   : > { %v798_v14 = vmax.f32 %v766_v13, 0.0  ;;  %822 = vst.msk [vmem:[#allocation2 + $0x30] sm:$0xff] %vm814_vm1, %v2881_v10  ;;  %v758_v41 = vadd.f32 %v3075_v9, %v722_v28  ;;  %v725_v51 = vmul.f32 %v3064_v8, %v689_v43  ;;  %v705_v52 = vld [vmem:[%s3070_s29 + $0xd8] sm:$0xff]  ;;  %v775_v54 = vadd.f32 %v3075_v9, %v739_v42  ;;  %v690_v60 = vld [vmem:[%s3070_s29 + $0x60] sm:$0xff]  ;;  %v700_v28 = vld [vmem:[%s3070_s29 + $0xb0] sm:$0xff]  ;;  %s660_s23 = scalar_lea.vmem [#allocation6], %s3913_s26 }
  0x2e   : > { %824 = vst.msk [vmem:[#allocation2 + $0x40] sm:$0xff] %vm814_vm1, %v2881_v10  ;;  %v806_v23 = vmax.f32 %v774_v22, 0.0  ;;  %v733_v55 = vmul.f32 %v3064_v8, %v697_v46  ;;  %v791_v57 = vmax.f32 %v759_v44, 0.0  ;;  %v776_v58 = vadd.f32 %v3075_v9, %v740_v45  ;;  %v693_v42 = vld [vmem:[%s3070_s29 + $0x78] sm:$0xff]  ;;  %s2477_s19 = sshll.u32 %s660_s23, 4  ;;  %s2478_s19 = int_to_ptr.vmem [resolvable:$true] %s2477_s19 }
  0x2f   : > { %907 = vst.msk [vmem:[#allocation2 + $0xa0] sm:$0xff] %vm814_vm1, %v798_v14  ;;  %v938_v15 = vld [vmem:[#allocation2 + $0x90] sm:$0xff]  ;;  %v790_v53 = vmax.f32 %v758_v41, 0.0  ;;  %v734_v59 = vmul.f32 %v3064_v8, %v698_v49  ;;  %v799_v61 = vmax.f32 %v767_v47, 0.0  ;;  %v760_v62 = vadd.f32 %v3075_v9, %v724_v48 }
  0x30   : > { %826 = vst.msk [vmem:[#allocation2 + $0x50] sm:$0xff] %vm814_vm1, %v2881_v10  ;;  %v741_v63 = vmul.f32 %v3064_v8, %v705_v52  ;;  %v800_v1 = vmax.f32 %v768_v50, 0.0  ;;  %v761_v2 = vadd.f32 %v3075_v9, %v725_v51  ;;  %v742_v3 = vmul.f32 %v3064_v8, %v706_v56  ;;  %v692_v41 = vld [vmem:[%s3070_s29 + $0x70] sm:$0xff] }
  0x31   : > { %828 = vst.msk [vmem:[#allocation2 + $0x60] sm:$0xff] %vm814_vm1, %v2881_v10  ;;  %v924_v27 = vld [vmem:[#allocation2] sm:$0xff]  ;;  %v807_v4 = vmax.f32 %v775_v54, 0.0  ;;  %v769_v5 = vadd.f32 %v3075_v9, %v733_v55  ;;  %v726_v6 = vmul.f32 %v3064_v8, %v690_v60  ;;  %v808_v7 = vmax.f32 %v776_v58, 0.0 }
  0x32   : > { %830 = vst.msk [vmem:[#allocation2 + $0x70] sm:$0xff] %vm814_vm1, %v2881_v10  ;;  %v770_v11 = vadd.f32 %v3075_v9, %v734_v59  ;;  %v727_v12 = vmul.f32 %v3064_v8, %v691_v0  ;;  %v792_v13 = vmax.f32 %v760_v62, 0.0  ;;  %v777_v14 = vadd.f32 %v3075_v9, %v741_v63 }
  0x33   : > { %832 = vst.msk [vmem:[#allocation2 + $0x80] sm:$0xff] %vm814_vm1, %v2881_v10  ;;  %v801_v18 = vmax.f32 %v769_v5, 0.0  ;;  %v762_v19 = vadd.f32 %v3075_v9, %v726_v6  ;;  %v736_v35 = vmul.f32 %v3064_v8, %v700_v28  ;;  %v728_v52 = vmul.f32 %v3064_v8, %v692_v41 }
  0x34   : > { %838 = vst.msk [vmem:[#allocation2 + $0xb0] sm:$0xff] %vm814_vm1, %v2881_v10  ;;  %v802_v20 = vmax.f32 %v770_v11, 0.0  ;;  %v763_v21 = vadd.f32 %v3075_v9, %v727_v12  ;;  %v809_v22 = vmax.f32 %v777_v14, 0.0  ;;  %v678_v12 = vld [vmem:[%s3070_s29] sm:$0xff]  ;;  %v679_v14 = vld [vmem:[%s3070_s29 + $0x8] sm:$0xff]  ;;  %vm2259_vm7 = vcmask 15360  }
  0x35   : > { %840 = vst.msk [vmem:[#allocation2 + $0xc0] sm:$0xff] %vm814_vm1, %v2881_v10  ;;  %v794_v26 = vmax.f32 %v762_v19, 0.0  ;;  %v772_v47 = vadd.f32 %v3075_v9, %v736_v35  ;;  %v764_v60 = vadd.f32 %v3075_v9, %v728_v52 }
  0x36   : > { %v3105_v16 = vld [vmem:[#allocation2 + $0xa0] sm:$0xff]  ;;  %842 = vst.msk [vmem:[#allocation2 + $0xd0] sm:$0xff] %vm814_vm1, %v2881_v10  ;;  %v795_v31 = vmax.f32 %v763_v21, 0.0  ;;  %v2647_v21 = vld [vmem:[%s4041_s21 + $0xe] sm:$0x3] }
  0x37   : > { %v946_v17 = vpack.c.bf16 %v3105_v16, %v938_v15  ;;  %844 = vst.msk [vmem:[#allocation2 + $0xe0] sm:$0xff] %vm814_vm1, %v2881_v10  ;;  %v793_v15 = vmax.f32 %v761_v2, 0.0  ;;  %v796_v62 = vmax.f32 %v764_v60, 0.0 }
  0x38   : > { %846 = vst.msk [vmem:[#allocation2 + $0xf0] sm:$0xff] %vm814_vm1, %v2881_v10 }
  0x39   : > { %2614 = vmatmul.msk.bf16.vlgmr.msra.gmra.mxu0 %vm814_vm1, %v946_v17  ;;  %848 = vst.msk [vmem:[#allocation2 + $0x100] sm:$0xff] %vm814_vm1, %v2881_v10  ;;  %v778_v17 = vadd.f32 %v3075_v9, %v742_v3 }
  0x3a   : > { %850 = vst.msk [vmem:[#allocation2 + $0x110] sm:$0xff] %vm814_vm1, %v2881_v10 }
  0x3b   : > { %852 = vst.msk [vmem:[#allocation2 + $0x120] sm:$0xff] %vm814_vm1, %v2881_v10  ;;  %v810_v24 = vmax.f32 %v778_v17, 0.0  ;;  %v715_v17 = vmul.f32 %v3064_v8, %v679_v14 }
  0x3c   : > { %854 = vst.msk [vmem:[#allocation2 + $0x130] sm:$0xff] %vm814_vm1, %v2881_v10 }
  0x3d   : > { %856 = vst.msk [vmem:[#allocation2 + $0x140] sm:$0xff] %vm814_vm1, %v2881_v10 }
  0x3e   : > { %858 = vst.msk [vmem:[#allocation2 + $0x150] sm:$0xff] %vm814_vm1, %v2881_v10 }
  0x3f   : > { %860 = vst.msk [vmem:[#allocation2 + $0x160] sm:$0xff] %vm814_vm1, %v2881_v10 }
  0x40   : > { %862 = vst.msk [vmem:[#allocation2 + $0x170] sm:$0xff] %vm814_vm1, %v2881_v10 }
  0x41   : > { %864 = vst.msk [vmem:[#allocation2 + $0x180] sm:$0xff] %vm814_vm1, %v2881_v10 }
  0x42   : > { %866 = vst.msk [vmem:[#allocation2 + $0x190] sm:$0xff] %vm814_vm1, %v2881_v10 }
  0x43   : > { %870 = vst.msk [vmem:[#allocation2 + $0x1b0] sm:$0xff] %vm814_vm1, %v2881_v10 }
  0x44   : > { %872 = vst.msk [vmem:[#allocation2 + $0x1c0] sm:$0xff] %vm814_vm1, %v2881_v10 }
  0x45   : > { %874 = vst.msk [vmem:[#allocation2 + $0x1d0] sm:$0xff] %vm814_vm1, %v2881_v10 }
  0x46   : > { %876 = vst.msk [vmem:[#allocation2 + $0x1e0] sm:$0xff] %vm814_vm1, %v2881_v10 }
  0x47   : > { %878 = vst.msk [vmem:[#allocation2 + $0x1f0] sm:$0xff] %vm814_vm1, %v2881_v10 }
  0x48   : > { %880 = vst.msk [vmem:[#allocation2 + $0x200] sm:$0xff] %vm814_vm1, %v2881_v10 }
  0x49   : > { %882 = vst.msk [vmem:[#allocation2 + $0x210] sm:$0xff] %vm814_vm1, %v2881_v10 }
  0x4a   : > { %884 = vst.msk [vmem:[#allocation2 + $0x220] sm:$0xff] %vm814_vm1, %v2881_v10 }
  0x4b   : > { %819 = vst.msk [vmem:[#allocation2 + $0x18] sm:$0x1] %vm816_vm2, %v2881_v10 }
  0x4c   : > { %916 = vst.msk [vmem:[#allocation2 + $0x11] sm:$0xff] %vm814_vm1, %v806_v23 }
  0x4d   : > { %817 = vst.msk [vmem:[#allocation2 + $0x8] sm:$0x1] %vm816_vm2, %v2881_v10 }
  0x4e   : > { %821 = vst.msk [vmem:[#allocation2 + $0x28] sm:$0x1] %vm816_vm2, %v2881_v10 }
  0x4f   : > { %823 = vst.msk [vmem:[#allocation2 + $0x38] sm:$0x1] %vm816_vm2, %v2881_v10 }
  0x50   : > { %825 = vst.msk [vmem:[#allocation2 + $0x48] sm:$0x1] %vm816_vm2, %v2881_v10 }
  0x51   : > { %827 = vst.msk [vmem:[#allocation2 + $0x58] sm:$0x1] %vm816_vm2, %v2881_v10 }
  0x52   : > { %829 = vst.msk [vmem:[#allocation2 + $0x68] sm:$0x1] %vm816_vm2, %v2881_v10 }
  0x53   : > { %v3182_v32 = vld [vmem:[#allocation2 + $0x10] sm:$0xff]  ;;  %831 = vst.msk [vmem:[#allocation2 + $0x78] sm:$0x1] %vm816_vm2, %v2881_v10 }
  0x54   : > { %v3186_v33 = vld [vmem:[#allocation2 + $0x11] sm:$0xff]  ;;  %v932_v36 = vpack.c.bf16 %v3182_v32, %v924_v27  ;;  %833 = vst.msk [vmem:[#allocation2 + $0x88] sm:$0x1] %vm816_vm2, %v2881_v10  ;;  %v1041_v37 = vld [vmem:[#allocation2 + $0x1] sm:$0xff] }
  0x55   : > { %853 = vst.msk [vmem:[#allocation2 + $0x128] sm:$0x1] %vm816_vm2, %v2881_v10  ;;  %v1049_v40 = vpack.c.bf16 %v3186_v33, %v1041_v37  ;;  %v699_v27 = vld [vmem:[%s3070_s29 + $0xa8] sm:$0xff]  ;;  %v708_v37 = vld [vmem:[%s3070_s29 + $0xf0] sm:$0xff] }
  0x56   : > { %2618 = vmatmul.msk.bf16.vlgmr.msra.gmra.mxu1 %vm814_vm1, %v932_v36  ;;  %855 = vst.msk [vmem:[#allocation2 + $0x138] sm:$0x1] %vm816_vm2, %v2881_v10  ;;  %v735_v34 = vmul.f32 %v3064_v8, %v699_v27  ;;  %v707_v36 = vld [vmem:[%s3070_s29 + $0xe8] sm:$0xff] }
  0x57   : > { %857 = vst.msk [vmem:[#allocation2 + $0x148] sm:$0x1] %vm816_vm2, %v2881_v10  ;;  %2623 = vmatmul.msk.bf16.vlgmr.msra.gmra.mxu2 %vm814_vm1, %v1049_v40  ;;  %v743_v39 = vmul.f32 %v3064_v8, %v707_v36  ;;  %v744_v40 = vmul.f32 %v3064_v8, %v708_v37 }
  0x58   : > { %859 = vst.msk [vmem:[#allocation2 + $0x158] sm:$0x1] %vm816_vm2, %v2881_v10  ;;  %v771_v46 = vadd.f32 %v3075_v9, %v735_v34 }
  0x59   : > { %861 = vst.msk [vmem:[#allocation2 + $0x168] sm:$0x1] %vm816_vm2, %v2881_v10  ;;  %v779_v50 = vadd.f32 %v3075_v9, %v743_v39  ;;  %v780_v51 = vadd.f32 %v3075_v9, %v744_v40 }
  0x5a   : > { %863 = vst.msk [vmem:[#allocation2 + $0x178] sm:$0x1] %vm816_vm2, %v2881_v10  ;;  %v803_v56 = vmax.f32 %v771_v46, 0.0 }
  0x5b   : > { %865 = vst.msk [vmem:[#allocation2 + $0x188] sm:$0x1] %vm816_vm2, %v2881_v10  ;;  %v811_v58 = vmax.f32 %v779_v50, 0.0  ;;  %v812_v59 = vmax.f32 %v780_v51, 0.0  ;;  %v681_v50 = vld [vmem:[%s3070_s29 + $0x18] sm:$0xff] }
  0x5c   : > { %867 = vst.msk [vmem:[#allocation2 + $0x198] sm:$0x1] %vm816_vm2, %v2881_v10 }
  0x5d   : > { %898 = vst.msk [vmem:[#allocation2 + $0x121] sm:$0xff] %vm814_vm1, %v790_v53  ;;  %v729_v53 = vmul.f32 %v3064_v8, %v693_v42 }
  0x5e   : > { %899 = vst.msk [vmem:[#allocation2 + $0x131] sm:$0xff] %vm814_vm1, %v791_v57  ;;  %v804_v57 = vmax.f32 %v772_v47, 0.0  ;;  %v680_v47 = vld [vmem:[%s3070_s29 + $0x10] sm:$0xff] }
  0x5f   : > { %908 = vst.msk [vmem:[#allocation2 + $0xb0] sm:$0xff] %vm814_vm1, %v799_v61  ;;  %v765_v61 = vadd.f32 %v3075_v9, %v729_v53  ;;  %v716_v52 = vmul.f32 %v3064_v8, %v680_v47  ;;  %v717_v53 = vmul.f32 %v3064_v8, %v681_v50 }
  0x60   : > { %909 = vst.msk [vmem:[#allocation2 + $0xc0] sm:$0xff] %vm814_vm1, %v800_v1 }
  0x61   : > { %917 = vst.msk [vmem:[#allocation2 + $0x21] sm:$0xff] %vm814_vm1, %v807_v4  ;;  %v797_v63 = vmax.f32 %v765_v61, 0.0 }
  0x62   : > { %918 = vst.msk [vmem:[#allocation2 + $0x31] sm:$0xff] %vm814_vm1, %v808_v7 }
  0x63   : > { %900 = vst.msk [vmem:[#allocation2 + $0x141] sm:$0xff] %vm814_vm1, %v792_v13 }
  0x64   : > { %v1107_v23 = vld [vmem:[#allocation2 + $0x120] sm:$0xff]  ;;  %901 = vst.msk [vmem:[#allocation2 + $0x151] sm:$0xff] %vm814_vm1, %v793_v15  ;;  %v714_v15 = vmul.f32 %v3064_v8, %v678_v12 }
  0x65   : > { %v1108_v25 = vld [vmem:[#allocation2 + $0x130] sm:$0xff]  ;;  %910 = vst.msk [vmem:[#allocation2 + $0xd0] sm:$0xff] %vm814_vm1, %v801_v18  ;;  %v682_v12 = vld [vmem:[%s3070_s29 + $0x20] sm:$0xff] }
  0x66   : > { %v1115_v29 = vpack.c.bf16 %v1108_v25, %v1107_v23  ;;  %v3256_v30 = vld [vmem:[#allocation2 + $0xb0] sm:$0xff]  ;;  %911 = vst.msk [vmem:[#allocation2 + $0xe0] sm:$0xff] %vm814_vm1, %v802_v20  ;;  %v2642_v20 = vld [vmem:[%s4041_s21 + $0xc] sm:$0x3]  ;;  %v2637_v25 = vld [vmem:[%s4041_s21 + $0xa] sm:$0x3] }
  0x67   : > { %v3263_v38 = vld [vmem:[#allocation2 + $0xc0] sm:$0xff]  ;;  %919 = vst.msk [vmem:[#allocation2 + $0x41] sm:$0xff] %vm814_vm1, %v809_v22  ;;  %v3335_v22 = vadd.f32 %v3075_v9, %v714_v15  ;;  %v1332_v23 = vsel %vm964_vm0, %v2642_v20, 0  ;;  %v1266_v27 = vsel %vm964_vm0, %v2637_v25, 0  ;;  %v718_v15 = vmul.f32 %v3064_v8, %v682_v12 }
  0x68   : > { %2628 = vmatmul.msk.bf16.vlgmr.msra.gmra.mxu3 %vm814_vm1, %v1115_v29  ;;  %v947_v43 = vpack.c.bf16 %v3263_v38, %v3256_v30  ;;  %v3273_v44 = vld [vmem:[#allocation2 + $0x20] sm:$0xff]  ;;  %920 = vst.msk [vmem:[#allocation2 + $0x51] sm:$0xff] %vm814_vm1, %v810_v24  ;;  %v1398_v24 = vsel %vm964_vm0, %v2647_v21, 0  ;;  %1341 = vmatpush.bf16.msrb.mxu2 %v1332_v23  ;;  %v1379_v25 = vpack.c.bf16 %v3256_v30, %v3105_v16 }
  0x69   : > { %v3275_v45 = vld [vmem:[#allocation2 + $0x21] sm:$0xff]  ;;  %v3280_v48 = vld [vmem:[#allocation2 + $0x30] sm:$0xff]  ;;  %902 = vst.msk [vmem:[#allocation2 + $0x161] sm:$0xff] %vm814_vm1, %v794_v26  ;;  %v3343_v26 = vadd.f32 %v3075_v9, %v715_v17  ;;  %v782_v28 = vmax.f32 %v3335_v22, 0.0  ;;  %1407 = vmatpush.bf16.msrb.mxu3 %v1398_v24  ;;  %1275 = vmatpush.bf16.msrb.mxu1 %v1266_v27  ;;  %v3409_v20 = vadd.f32 %v3075_v9, %v718_v15 }
  0x6a   : > { %v3282_v49 = vld [vmem:[#allocation2 + $0x31] sm:$0xff]  ;;  %2615 = vmatmul.msk.bf16.gmra.mxu0 %vm814_vm1, %v947_v43  ;;  %v933_v54 = vpack.c.bf16 %v3280_v48, %v3273_v44  ;;  %903 = vst.msk [vmem:[#allocation2 + $0x171] sm:$0xff] %vm814_vm1, %v795_v31  ;;  %v1109_v0 = vld [vmem:[#allocation2 + $0x140] sm:$0xff] }
  0x6b   : > { %v1050_v55 = vpack.c.bf16 %v3282_v49, %v3275_v45  ;;  %912 = vst.msk [vmem:[#allocation2 + $0xf0] sm:$0xff] %vm814_vm1, %v803_v56  ;;  %v1110_v1 = vld [vmem:[#allocation2 + $0x150] sm:$0xff]  ;;  %v783_v29 = vmax.f32 %v3343_v26, 0.0  ;;  %v3385_v56 = vadd.f32 %v3075_v9, %v716_v52  ;;  %v786_v23 = vmax.f32 %v3409_v20, 0.0  ;;  %v1241_v27 = vld [vmem:[#allocation2 + $0x141] sm:$0xff] }
  0x6c   : > { %2619 = vmatmul.msk.bf16.gmra.mxu1 %vm814_vm1, %v933_v54  ;;  %913 = vst.msk [vmem:[#allocation2 + $0x100] sm:$0xff] %vm814_vm1, %v804_v57  ;;  %v3305_v2 = vld [vmem:[#allocation2 + $0xd0] sm:$0xff]  ;;  %v1116_v4 = vpack.c.bf16 %v1110_v1, %v1109_v0  ;;  %v3388_v57 = vadd.f32 %v3075_v9, %v717_v53  ;;  %v1239_v1 = vld [vmem:[#allocation2 + $0x121] sm:$0xff] }
  0x6d   : > { %2624 = vmatmul.msk.bf16.gmra.mxu2 %vm814_vm1, %v1050_v55  ;;  %921 = vst.msk [vmem:[#allocation2 + $0x61] sm:$0xff] %vm814_vm1, %v811_v58  ;;  %v3307_v3 = vld [vmem:[#allocation2 + $0xe0] sm:$0xff]  ;;  %v2652_v31 = vld [vmem:[%s4041_s21 + $0x10] sm:$0x3]  ;;  %v784_v58 = vmax.f32 %v3385_v56, 0.0 }
  0x6e   : > { %922 = vst.msk [vmem:[#allocation2 + $0x71] sm:$0xff] %vm814_vm1, %v812_v59  ;;  %v3309_v5 = vld [vmem:[#allocation2 + $0x40] sm:$0xff]  ;;  %v948_v13 = vpack.c.bf16 %v3307_v3, %v3305_v2  ;;  %v1464_v34 = vsel %vm964_vm0, %v2652_v31, 0  ;;  %v785_v59 = vmax.f32 %v3388_v57, 0.0  ;;  %v1242_v31 = vld [vmem:[#allocation2 + $0x151] sm:$0xff] }
  0x6f   : > { %904 = vst.msk [vmem:[#allocation2 + $0x181] sm:$0xff] %vm814_vm1, %v796_v62  ;;  %v3311_v6 = vld [vmem:[#allocation2 + $0x41] sm:$0xff]  ;;  %v3313_v7 = vld [vmem:[#allocation2 + $0x50] sm:$0xff]  ;;  %1473 = vmatpush.bf16.msra.mxu0 %v1464_v34  ;;  %v1314_v52 = vpack.c.bf16 %v3309_v5, %v3280_v48  ;;  %v1248_v53 = vpack.c.bf16 %v1242_v31, %v1241_v27 }
  0x70   : > { %905 = vst.msk [vmem:[#allocation2 + $0x191] sm:$0xff] %vm814_vm1, %v797_v63  ;;  %v3315_v11 = vld [vmem:[#allocation2 + $0x51] sm:$0xff]  ;;  %v934_v18 = vpack.c.bf16 %v3313_v7, %v3309_v5  ;;  %v1111_v35 = vld [vmem:[#allocation2 + $0x160] sm:$0xff]  ;;  %v1446_v27 = vpack.c.bf16 %v3311_v6, %v3282_v49  ;;  %v1504_v22 = vpack.c.bf16 %v785_v59, %v784_v58 }
  0x71   : > { %v1051_v19 = vpack.c.bf16 %v3315_v11, %v3311_v6  ;;  %889 = vst.msk [vmem:[#allocation2 + $0x1b0] sm:$0xff] %vm814_vm1, %v782_v28  ;;  %v1112_v36 = vld [vmem:[#allocation2 + $0x170] sm:$0xff] }
  0x72   : > { %890 = vst.msk [vmem:[#allocation2 + $0x1c0] sm:$0xff] %vm814_vm1, %v783_v29  ;;  %v3361_v37 = vld [vmem:[#allocation2 + $0xf0] sm:$0xff]  ;;  %v1117_v40 = vpack.c.bf16 %v1112_v36, %v1111_v35  ;;  %v685_v35 = vld [vmem:[%s3070_s29 + $0x38] sm:$0xff] }
  0x73   : > { %v3363_v39 = vld [vmem:[#allocation2 + $0x100] sm:$0xff]  ;;  %891 = vst.msk [vmem:[#allocation2 + $0x1d0] sm:$0xff] %vm814_vm1, %v784_v58  ;;  %v684_v34 = vld [vmem:[%s3070_s29 + $0x30] sm:$0xff]  ;;  %v709_v36 = vld [vmem:[%s3070_s29 + $0xf8] sm:$0xff]  ;;  %v721_v50 = vmul.f32 %v3064_v8, %v685_v35 }
  0x74   : > { %v3365_v41 = vld [vmem:[#allocation2 + $0x60] sm:$0xff]  ;;  %v949_v51 = vpack.c.bf16 %v3363_v39, %v3361_v37  ;;  %892 = vst.msk [vmem:[#allocation2 + $0x1e0] sm:$0xff] %vm814_vm1, %v785_v59  ;;  %v720_v47 = vmul.f32 %v3064_v8, %v684_v34 }
  0x75   : > { %v3367_v42 = vld [vmem:[#allocation2 + $0x70] sm:$0xff]  ;;  %v3369_v43 = vld [vmem:[#allocation2 + $0x61] sm:$0xff]  ;;  %893 = vst.msk [vmem:[#allocation2 + $0x1f0] sm:$0xff] %vm814_vm1, %v786_v23  ;;  %v3441_v30 = vadd.f32 %v3075_v9, %v721_v50 }
  0x76   : > { %v3371_v46 = vld [vmem:[#allocation2 + $0x71] sm:$0xff]  ;;  %v935_v54 = vpack.c.bf16 %v3367_v42, %v3365_v41  ;;  %v1113_v60 = vld [vmem:[#allocation2 + $0x180] sm:$0xff]  ;;  %v3438_v16 = vadd.f32 %v3075_v9, %v720_v47  ;;  %1588 = vst.msk [vmem:[#allocation3 + $0x10] sm:$0xff] %vm1584_vm4, %v2881_v10 }
  0x77   : > { %v1052_v55 = vpack.c.bf16 %v3371_v46, %v3369_v43  ;;  %v1114_v61 = vld [vmem:[#allocation2 + $0x190] sm:$0xff]  ;;  %v789_v48 = vmax.f32 %v3441_v30, 0.0  ;;  %1589 = vst.msk [vmem:[#allocation3 + $0x18] sm:$0x3] %vm1586_vm5, %v2881_v10 }
  0x78   : > { %2629 = vmatmul.msk.bf16.gmra.mxu3 %vm814_vm1, %v1116_v4  ;;  %v1173_v62 = vld [vmem:[#allocation2 + $0x1b0] sm:$0xff]  ;;  %v1118_v0 = vpack.c.bf16 %v1114_v61, %v1113_v60  ;;  %v788_v61 = vmax.f32 %v3438_v16, 0.0  ;;  %1585 = vst.msk [vmem:[#allocation3] sm:$0xff] %vm1584_vm4, %v2881_v10 }
  0x79   : > { %v1174_v63 = vld [vmem:[#allocation2 + $0x1c0] sm:$0xff]  ;;  %v1240_v4 = vld [vmem:[#allocation2 + $0x131] sm:$0xff]  ;;  %896 = vst.msk [vmem:[#allocation2 + $0x220] sm:$0xff] %vm814_vm1, %v789_v48 }
  0x7a   : > { %2616 = vmatmul.msk.bf16.gmra.mxu0 %vm814_vm1, %v948_v13  ;;  %v683_v13 = vld [vmem:[%s3070_s29 + $0x28] sm:$0xff]  ;;  %v1181_v14 = vpack.c.bf16 %v1174_v63, %v1173_v62  ;;  %895 = vst.msk [vmem:[#allocation2 + $0x210] sm:$0xff] %vm814_vm1, %v788_v61 }
  0x7b   : > { %v719_v17 = vmul.f32 %v3064_v8, %v683_v13  ;;  %v1315_v13 = vpack.c.bf16 %v3365_v41, %v3313_v7  ;;  %1587 = vst.msk [vmem:[#allocation3 + $0x8] sm:$0x3] %vm1586_vm5, %v2881_v10 }
  0x7c   : > { %2620 = vmatmul.msk.bf16.gmra.mxu1 %vm814_vm1, %v934_v18  ;;  %v1313_v18 = vpack.c.bf16 %v3273_v44, %v3182_v32  ;;  %v1175_v32 = vld [vmem:[#allocation2 + $0x1d0] sm:$0xff]  ;;  %v1176_v44 = vld [vmem:[#allocation2 + $0x1e0] sm:$0xff]  ;;  %1590 = vst.msk [vmem:[#allocation3 + $0x20] sm:$0xff] %vm1584_vm4, %v2881_v10 }
  0x7d   : > { %2625 = vmatmul.msk.bf16.gmra.mxu2 %vm814_vm1, %v1051_v19  ;;  %v1247_v19 = vpack.c.bf16 %v1240_v4, %v1239_v1  ;;  %v3412_v21 = vadd.f32 %v3075_v9, %v719_v17  ;;  %v1243_v1 = vld [vmem:[#allocation2 + $0x161] sm:$0xff]  ;;  %v1244_v4 = vld [vmem:[#allocation2 + $0x171] sm:$0xff]  ;;  %1591 = vst.msk [vmem:[#allocation3 + $0x28] sm:$0x3] %vm1586_vm5, %v2881_v10 }
  0x7e   : > { %1592 = vst.msk [vmem:[#allocation3 + $0x30] sm:$0xff] %vm1584_vm4, %v2881_v10 }
  0x7f   : > { %v787_v24 = vmax.f32 %v3412_v21, 0.0  ;;  %1593 = vst.msk [vmem:[#allocation3 + $0x38] sm:$0x3] %vm1586_vm5, %v2881_v10 }
  0x80   : > { %v1180_v17 = vld [vmem:[#allocation2 + $0x220] sm:$0xff]  ;;  %1594 = vst.msk [vmem:[#allocation3 + $0x40] sm:$0xff] %vm1584_vm4, %v2881_v10 }
  0x81   : > { %894 = vst.msk [vmem:[#allocation2 + $0x200] sm:$0xff] %vm814_vm1, %v787_v24  ;;  %v1179_v15 = vld [vmem:[#allocation2 + $0x210] sm:$0xff]  ;;  %v1505_v56 = vpack.c.bf16 %v787_v24, %v786_v23  ;;  %v1634_v23 = vld [vmem:[%s4045_s7] sm:$0xf] }
  0x82   : > { %v1707_v24 = vsel %vm1661_vm3, %v1634_v23, 0  ;;  %1595 = vst.msk [vmem:[#allocation3 + $0x48] sm:$0x3] %vm1586_vm5, %v2881_v10 }
  0x83   : > { %1716 = vmatpush.bf16.msra.mxu3 %v1707_v24  ;;  %1596 = vst.msk [vmem:[#allocation3 + $0x50] sm:$0xff] %vm1584_vm4, %v2881_v10 }
  0x84   : > { %1597 = vst.msk [vmem:[#allocation3 + $0x58] sm:$0x3] %vm1586_vm5, %v2881_v10 }
  0x85   : > { %1598 = vst.msk [vmem:[#allocation3 + $0x60] sm:$0xff] %vm1584_vm4, %v2881_v10 }
  0x86   : > { %1599 = vst.msk [vmem:[#allocation3 + $0x68] sm:$0x3] %vm1586_vm5, %v2881_v10 }
  0x87   : > { %1600 = vst.msk [vmem:[#allocation3 + $0x70] sm:$0xff] %vm1584_vm4, %v2881_v10 }
  0x88   : > { %2630 = vmatmul.msk.bf16.gmra.mxu3 %vm814_vm1, %v1117_v40  ;;  %v1182_v40 = vpack.c.bf16 %v1176_v44, %v1175_v32  ;;  %v1184_v32 = vpack.c.bf16 %v1180_v17, %v1179_v15  ;;  %1601 = vst.msk [vmem:[#allocation3 + $0x78] sm:$0x3] %vm1586_vm5, %v2881_v10 }
  0x89   : > { %1602 = vst.msk [vmem:[#allocation3 + $0x80] sm:$0xff] %vm1584_vm4, %v2881_v10 }
  0x8a   : > { %2617 = vmatmul.msk.bf16.gmra.mxu0 %vm814_vm1, %v949_v51  ;;  %v745_v51 = vmul.f32 %v3064_v8, %v709_v36  ;;  %1603 = vst.msk [vmem:[#allocation3 + $0x88] sm:$0x3] %vm1586_vm5, %v2881_v10 }
  0x8b   : > { %1604 = vst.msk [vmem:[#allocation3 + $0x90] sm:$0xff] %vm1584_vm4, %v2881_v10 }
  0x8c   : > { %2621 = vmatmul.msk.bf16.gmra.mxu1 %vm814_vm1, %v935_v54  ;;  %v701_v54 = vld [vmem:[%s3070_s29 + $0xb8] sm:$0xff]  ;;  %1605 = vst.msk [vmem:[#allocation3 + $0x98] sm:$0x3] %vm1586_vm5, %v2881_v10  ;;  %s2475_s29 = scalar_lea.hbm %s4014_s20, %s3014_s2 }
  0x8d   : > { %2626 = vmatmul.msk.bf16.gmra.mxu2 %vm814_vm1, %v1052_v55  ;;  %v781_v55 = vadd.f32 %v3075_v9, %v745_v51  ;;  %v737_v60 = vmul.f32 %v3064_v8, %v701_v54  ;;  %v1177_v8 = vld [vmem:[#allocation2 + $0x1f0] sm:$0xff] }
  0x8f   : > { %v813_v5 = vmax.f32 %v781_v55, 0.0  ;;  %v773_v62 = vadd.f32 %v3075_v9, %v737_v60  ;;  %v1380_v9 = vpack.c.bf16 %v3305_v2, %v3263_v38  ;;  %v1381_v38 = vpack.c.bf16 %v3361_v37, %v3307_v3 }
  0x90   : > { %v1445_v37 = vpack.c.bf16 %v3275_v45, %v3186_v33  ;;  %v1447_v33 = vpack.c.bf16 %v3369_v43, %v3315_v11 }
  0x91   : > { %v805_v63 = vmax.f32 %v773_v62, 0.0  ;;  %923 = vst.msk [vmem:[#allocation2 + $0x81] sm:$0xff] %vm814_vm1, %v813_v5  ;;  %v2661_v62 = vld [vmem:[%s4045_s7 + $0x4] sm:$0xf] }
  0x93   : > { %914 = vst.msk [vmem:[#allocation2 + $0x110] sm:$0xff] %vm814_vm1, %v805_v63  ;;  %v1663_v63 = vsel %vm1661_vm3, %v2661_v62, 0  ;;  %v2675_v62 = vld [vmem:[%s4045_s7 + $0xc] sm:$0xf] }
  0x94   : > { %1672 = vmatpush.bf16.msra.mxu2 %v1663_v63 }
  0x98   : > { %2631 = vmatmul.msk.bf16.gmra.mxu3 %vm814_vm1, %v1118_v0  ;;  %v1178_v0 = vld [vmem:[#allocation2 + $0x200] sm:$0xff] }
  0x99   : > { %v1183_v12 = vpack.c.bf16 %v1178_v0, %v1177_v8  ;;  %v1312_v2 = vld [vmem:[#allocation2 + $0x80] sm:$0xff] }
  0x9a   : > { %2633 = vmatmul.msk.bf16.vlgmr.msrb.gmra.mxu0 %vm814_vm1, %v1181_v14  ;;  %v1249_v14 = vpack.c.bf16 %v1244_v4, %v1243_v1  ;;  %v1316_v7 = vpack.c.bf16 %v1312_v2, %v3367_v42  ;;  %v1378_v44 = vld [vmem:[#allocation2 + $0x110] sm:$0xff]  ;;  %v1444_v50 = vld [vmem:[#allocation2 + $0x81] sm:$0xff]  ;;  %v1503_v4 = vpack.c.bf16 %v783_v29, %v782_v28 }
  0x9b   : > { %v1382_v3 = vpack.c.bf16 %v1378_v44, %v3363_v39 }
  0x9c   : > { %2638 = vmatmul.msk.bf16.vlgmr.msrb.gmra.mxu1 %vm814_vm1, %v1247_v19  ;;  %v1246_v19 = vld [vmem:[#allocation2 + $0x191] sm:$0xff] }
  0x9d   : > { %2643 = vmatmul.msk.bf16.vlgmr.msrb.gmra.mxu2 %vm814_vm1, %v1313_v18  ;;  %v1245_v18 = vld [vmem:[#allocation2 + $0x181] sm:$0xff] }
  0x9e   : > { %v1250_v41 = vpack.c.bf16 %v1246_v19, %v1245_v18 }
  0xa8   : > { %2648 = vmatmul.msk.bf16.vlgmr.msrb.gmra.mxu3 %vm814_vm1, %v1379_v25 }
  0xaa   : > { %2634 = vmatmul.msk.bf16.gmra.mxu0 %vm814_vm1, %v1182_v40 }
  0xac   : > { %2639 = vmatmul.msk.bf16.gmra.mxu1 %vm814_vm1, %v1248_v53  ;;  %v1448_v53 = vpack.c.bf16 %v1444_v50, %v3371_v46  ;;  %v1507_v46 = vld [vmem:[%s4046_s0] sm:$0x3]  ;;  %s2884_s0 = smov 8  }
  0xad   : > { %2644 = vmatmul.msk.bf16.gmra.mxu2 %vm814_vm1, %v1314_v52  ;;  %v1521_v8 = vsel %vm964_vm0, %v1507_v46, 0  ;;  %v1831_v46 = vsel %vm1661_vm3, %v2675_v62, 0 }
  0xae   : > { %1530 = vmatpush.bf16.msra.mxu1 %v1521_v8 }
  0xb2   : > { %1840 = vmatpush.bf16.msrb.mxu1 %v1831_v46 }
  0xb6   : > { %v3474_v25 = vpop.f32.mrf.mxu0 }
  0xb8   : > { %2649 = vmatmul.msk.bf16.gmra.mxu3 %vm814_vm1, %v1380_v9 }
  0xba   : > { %2635 = vmatmul.msk.bf16.gmra.mxu0 %vm814_vm1, %v1183_v12 }
  0xbc   : > { %2640 = vmatmul.msk.bf16.gmra.mxu1 %vm814_vm1, %v1249_v14 }
  0xbd   : > { %2645 = vmatmul.msk.bf16.gmra.mxu2 %vm814_vm1, %v1315_v13 }
  0xbe   : > { %v3481_v42 = vpop.f32.mrf.mxu0 }
  0xc8   : > { %2650 = vmatmul.msk.bf16.gmra.mxu3 %vm814_vm1, %v1381_v38 }
  0xca   : > { %2636 = vmatmul.msk.bf16.gmra.mxu0 %vm814_vm1, %v1184_v32 }
  0xcc   : > { %2641 = vmatmul.msk.bf16.gmra.mxu1 %vm814_vm1, %v1250_v41 }
  0xcd   : > { %2646 = vmatmul.msk.bf16.gmra.mxu2 %vm814_vm1, %v1316_v7 }
  0xd3   : > { %v1021_v35 = vpop.f32.mrf.mxu1 }
  0xd4   : > { %v1022_v41 = vadd.f32 %v1021_v35, %v3474_v25 }
  0xd8   : > { %2651 = vmatmul.msk.bf16.gmra.mxu3 %vm814_vm1, %v1382_v3 }
  0xda   : > { %2653 = vmatmul.msk.bf16.vlgmr.msra.gmra.mxu0 %vm814_vm1, %v1445_v37  ;;  %v1079_v39 = vpop.f32.mrf.mxu2  ;;  %v1506_v37 = vpack.c.bf16 %v789_v48, %v788_v61 }
  0xdb   : > { %v3496_v40 = vpop.f32.mrf.mxu1  ;;  %v1099_v3 = vadd.f32 %v1079_v39, %v1022_v41 }
  0xdc   : > { %2657 = vmatmul.msk.bf16.vlgmr.msra.gmra.mxu1 %vm814_vm1, %v1503_v4  ;;  %v1024_v35 = vadd.f32 %v3496_v40, %v3481_v42  ;;  %v2670_v42 = vld [vmem:[%s4045_s7 + $0x8] sm:$0xf] }
  0xe2   : > { %v3499_v49 = vpop.f32.mrf.mxu2 }
  0xe3   : > { %v1100_v16 = vadd.f32 %v3499_v49, %v1024_v35 }
  0xe7   : > { %v3485_v31 = vpop.f32.mrf.mxu0 }
  0xe9   : > { %v3505_v51 = vpop.f32.mrf.mxu1 }
  0xea   : > { %2654 = vmatmul.msk.bf16.gmra.mxu0 %vm814_vm1, %v1446_v27 }
  0xeb   : > { %v3490_v36 = vpop.f32.mrf.mxu3 }
  0xec   : > { %2658 = vmatmul.msk.bf16.gmra.mxu1 %vm814_vm1, %v1504_v22  ;;  %v1165_v25 = vadd.f32 %v3490_v36, %v1099_v3  ;;  %v1765_v36 = vsel %vm1661_vm3, %v2670_v42, 0  ;;  %v3652_v22 = vld [vmem:[%s4047_s5] ss:$0 sm:$0xff] }
  0xed   : > { %1774 = vmatpush.bf16.msrb.mxu0 %v1765_v36  ;;  %v1622_v42 = vld [vmem:[#allocation3] sm:$0xff] }
  0xee   : > { %v1738_v36 = vld [vmem:[#allocation3 + $0x2] sm:$0xff] }
  0xef   : > { %v3488_v34 = vpop.f32.mrf.mxu0 }
  0xf0   : > { %v3507_v52 = vpop.f32.mrf.mxu2 }
  0xf1   : > { %v3515_v54 = vpop.f32.mrf.mxu1 }
  0xf3   : > { %v3501_v6 = vpop.f32.mrf.mxu3 }
  0xf4   : > { %v1166_v40 = vadd.f32 %v3501_v6, %v1100_v16  ;;  %v1027_v6 = vadd.f32 %v3505_v51, %v3485_v31 }
  0xf7   : > { %v3494_v45 = vpop.f32.mrf.mxu0 }
  0xf8   : > { %v3517_v55 = vpop.f32.mrf.mxu2 }
  0xf9   : > { %v3531_v9 = vpop.f32.mrf.mxu1 }
  0xfa   : > { %2655 = vmatmul.msk.bf16.gmra.mxu0 %vm814_vm1, %v1447_v33  ;;  %v2680_v33 = vld [vmem:[%s4045_s7 + $0x10] sm:$0xf] }
  0xfb   : > { %v3512_v43 = vpop.f32.mrf.mxu3 }
  0xfc   : > { %2659 = vmatmul.msk.bf16.gmra.mxu1 %vm814_vm1, %v1505_v56  ;;  %v3661_v56 = vld [vmem:[%s4048_s6] ss:$0 sm:$0xff]  ;;  %s2805_s6 = scalar_lea.hbm %s4014_s20, 2 }
  0xff   : > { %v3503_v47 = vpop.f32.mrf.mxu0 }
 0x100   : > { %v3533_v1 = vpop.f32.mrf.mxu2 }
 0x101   : > { %v3544_v14 = vpop.f32.mrf.mxu1 }
 0x103   : > { %v3521_v5 = vpop.f32.mrf.mxu3 }
 0x107   : > { %v3510_v11 = vpop.f32.mrf.mxu0 }
 0x108   : > { %v3546_v15 = vpop.f32.mrf.mxu2 }
 0x109   : > { %v3552_v2 = vpop.f32.mrf.mxu1 }
 0x10a   : > { %2656 = vmatmul.msk.bf16.gmra.mxu0 %vm814_vm1, %v1448_v53  ;;  %v1897_v53 = vsel %vm1661_vm3, %v2680_v33, 0 }
 0x10b   : > { %v3539_v12 = vpop.f32.mrf.mxu3  ;;  %1906 = vmatpush.bf16.msrb.mxu2 %v1897_v53 }
 0x10c   : > { %2660 = vmatmul.msk.bf16.gmra.mxu1 %vm814_vm1, %v1506_v37 }
 0x10f   : > { %v3519_v60 = vpop.f32.mrf.mxu0 }
 0x110   : > { %v3558_v26 = vpop.f32.mrf.mxu2 }
 0x111   : > { %v3565_v18 = vpop.f32.mrf.mxu1 }
 0x113   : > { %v3548_v17 = vpop.f32.mrf.mxu3 }
 0x117   : > { %v1211_v0 = vpop.f32.mrf.mxu0 }
 0x118   : > { %v3567_v19 = vpop.f32.mrf.mxu2  ;;  %v1231_v39 = vadd.f32 %v1211_v0, %v1165_v25  ;;  %v1101_v0 = vadd.f32 %v3507_v52, %v1027_v6 }
 0x119   : > { %v1277_v57 = vpop.f32.mrf.mxu1 }
 0x11a   : > { %v1297_v48 = vadd.f32 %v1277_v57, %v1231_v39  ;;  %v1167_v57 = vadd.f32 %v3512_v43, %v1101_v0 }
 0x11b   : > { %v3563_v29 = vpop.f32.mrf.mxu3 }
 0x11f   : > { %v3542_v13 = vpop.f32.mrf.mxu0 }
 0x120   : > { %v1343_v59 = vpop.f32.mrf.mxu2  ;;  %v1232_v63 = vadd.f32 %v3542_v13, %v1166_v40 }
 0x121   : > { %v1279_v21 = vpop.f32.mrf.mxu1  ;;  %v1363_v49 = vadd.f32 %v1343_v59, %v1297_v48  ;;  %v1032_v48 = vadd.f32 %v3531_v9, %v3494_v45 }
 0x122   : > { %v1298_v51 = vadd.f32 %v1279_v21, %v1232_v63 }
 0x123   : > { %v3571_v7 = vpop.f32.mrf.mxu3  ;;  %v1103_v33 = vadd.f32 %v3533_v1, %v1032_v48 }
 0x125   : > { %v1169_v1 = vadd.f32 %v3539_v12, %v1103_v33 }
 0x127   : > { %v3550_v38 = vpop.f32.mrf.mxu0 }
 0x128   : > { %v1345_v27 = vpop.f32.mrf.mxu2  ;;  %v1233_v3 = vadd.f32 %v3550_v38, %v1167_v57 }
 0x129   : > { %v1282_v50 = vpop.f32.mrf.mxu1  ;;  %v1364_v59 = vadd.f32 %v1345_v27, %v1298_v51 }
 0x12a   : > { %v1299_v39 = vadd.f32 %v1282_v50, %v1233_v3 }
 0x12b   : > { %v1409_v44 = vpop.f32.mrf.mxu3 }
 0x12c   : > { %v1429_v4 = vadd.f32 %v1409_v44, %v1363_v49  ;;  %v1029_v44 = vadd.f32 %v3515_v54, %v3488_v34 }
 0x12e   : > { %v1102_v24 = vadd.f32 %v3517_v55, %v1029_v44 }
 0x12f   : > { %v3561_v28 = vpop.f32.mrf.mxu0 }
 0x130   : > { %v1348_v8 = vpop.f32.mrf.mxu2  ;;  %v1168_v27 = vadd.f32 %v3521_v5, %v1102_v24 }
 0x131   : > { %v1284_v21 = vpop.f32.mrf.mxu1  ;;  %v1365_v16 = vadd.f32 %v1348_v8, %v1299_v39 }
 0x132   : > { %v1234_v54 = vadd.f32 %v3561_v28, %v1168_v27 }
 0x133   : > { %v1411_v30 = vpop.f32.mrf.mxu3 }
 0x134   : > { %v1430_v25 = vadd.f32 %v1411_v30, %v1364_v59  ;;  %v1635_v30 = vld [vmem:[#allocation3 + $0x1] sm:$0xff]  ;;  %v1300_v5 = vadd.f32 %v1284_v21, %v1234_v54 }
 0x137   : > { %v3569_v32 = vpop.f32.mrf.mxu0 }
 0x138   : > { %v1350_v35 = vpop.f32.mrf.mxu2  ;;  %v1235_v51 = vadd.f32 %v3569_v32, %v1169_v1 }
 0x139   : > { %v1287_v49 = vpop.f32.mrf.mxu1  ;;  %v1366_v0 = vadd.f32 %v1350_v35, %v1300_v5 }
 0x13a   : > { %v1301_v3 = vadd.f32 %v1287_v49, %v1235_v51 }
 0x13b   : > { %v1414_v52 = vpop.f32.mrf.mxu3 }
 0x13c   : > { %v1431_v40 = vadd.f32 %v1414_v52, %v1365_v16 }
 0x13f   : > { %v3578_v58 = vpop.f32.mrf.mxu0 }
 0x140   : > { %v1353_v8 = vpop.f32.mrf.mxu2 }
 0x141   : > { %v1289_v21 = vpop.f32.mrf.mxu1 }
 0x143   : > { %v1416_v38 = vpop.f32.mrf.mxu3 }
 0x144   : > { %v1432_v12 = vadd.f32 %v1416_v38, %v1366_v0  ;;  %v2690_v0 = vld [vmem:[%s4045_s7 + $0x18] sm:$0xf] }
 0x147   : > { %v3585_v20 = vpop.f32.mrf.mxu0 }
 0x14b   : > { %v1419_v57 = vpop.f32.mrf.mxu3 }
 0x14f   : > { %v3616_v61 = vpop.f32.mrf.mxu0 }
 0x157   : > { %v1475_v31 = vpop.f32.mrf.mxu0 }
 0x158   : > { %v1495_v13 = vadd.f32 %v1475_v31, %v1429_v4  ;;  %v1034_v31 = vadd.f32 %v3544_v14, %v3503_v47  ;;  %v1367_v14 = vadd.f32 %v1353_v8, %v1301_v3 }
 0x15a   : > { %v1556_v41 = vmul.f32 %v3652_v22, %v1495_v13  ;;  %v1104_v52 = vadd.f32 %v3546_v15, %v1034_v31  ;;  %v1433_v39 = vadd.f32 %v1419_v57, %v1367_v14 }
 0x15c   : > { %v1568_v23 = vadd.f32 %v3661_v56, %v1556_v41  ;;  %v1170_v47 = vadd.f32 %v3548_v17, %v1104_v52 }
 0x15e   : > { %v1576_v37 = vmax.f32 %v1568_v23, 0.0  ;;  %v1236_v15 = vadd.f32 %v3578_v58, %v1170_v47 }
 0x15f   : > { %v1477_v10 = vpop.f32.mrf.mxu0 }
 0x160   : > { %1607 = vst.msk [vmem:[#allocation3 + $0x11] sm:$0xff] %vm1584_vm4, %v1576_v37  ;;  %v1496_v43 = vadd.f32 %v1477_v10, %v1430_v25  ;;  %v1355_v25 = vpop.f32.mrf.mxu2  ;;  %v1037_v37 = vadd.f32 %v3552_v2, %v3510_v11  ;;  %v1302_v16 = vadd.f32 %v1289_v21, %v1236_v15 }
 0x162   : > { %v1557_v34 = vmul.f32 %v3652_v22, %v1496_v43  ;;  %v1105_v10 = vadd.f32 %v3558_v26, %v1037_v37 }
 0x164   : > { %v1569_v55 = vadd.f32 %v3661_v56, %v1557_v34  ;;  %v1421_v34 = vpop.f32.mrf.mxu3 }
 0x166   : > { %v1577_v50 = vmax.f32 %v1569_v55, 0.0 }
 0x167   : > { %v1480_v53 = vpop.f32.mrf.mxu0  ;;  %v3680_v62 = vld [vmem:[#allocation3 + $0x11] sm:$0xff] }
 0x168   : > { %v1623_v46 = vld [vmem:[#allocation3 + $0x10] sm:$0xff]  ;;  %1609 = vst.msk [vmem:[#allocation3 + $0x21] sm:$0xff] %vm1584_vm4, %v1577_v50  ;;  %v1497_v45 = vadd.f32 %v1480_v53, %v1431_v40  ;;  %v1643_v9 = vpack.c.bf16 %v3680_v62, %v1635_v30  ;;  %v1171_v30 = vadd.f32 %v3563_v29, %v1105_v10  ;;  %v1039_v40 = vadd.f32 %v3565_v18, %v3519_v60  ;;  %v1358_v5 = vpop.f32.mrf.mxu2  ;;  %v2695_v10 = vld [vmem:[%s4045_s7 + $0x1c] sm:$0xf] }
 0x169   : > { %v3682_v28 = vld [vmem:[#allocation3 + $0x12] sm:$0xff]  ;;  %v1630_v6 = vpack.c.bf16 %v1623_v46, %v1622_v42  ;;  %v1368_v42 = vadd.f32 %v1355_v25, %v1302_v16  ;;  %v2095_v16 = vsel %vm1661_vm3, %v2695_v10, 0 }
 0x16a   : > { %v1746_v63 = vpack.c.bf16 %v3682_v28, %v1738_v36  ;;  %v1558_v4 = vmul.f32 %v3652_v22, %v1497_v45  ;;  %2662 = vmatmul.msk.bf16.vlgmr.msra.gmra.mxu2 %vm1584_vm4, %v1643_v9  ;;  %v1292_v36 = vpop.f32.mrf.mxu1  ;;  %v1237_v49 = vadd.f32 %v3585_v20, %v1171_v30  ;;  %v1106_v50 = vadd.f32 %v3567_v19, %v1039_v40  ;;  %v2685_v19 = vld [vmem:[%s4045_s7 + $0x14] sm:$0xf] }
 0x16b   : > { %2666 = vmatmul.msk.bf16.vlgmr.msra.gmra.mxu3 %vm1584_vm4, %v1630_v6  ;;  %v1434_v53 = vadd.f32 %v1421_v34, %v1368_v42  ;;  %v1963_v31 = vsel %vm1661_vm3, %v2685_v19, 0  ;;  %2104 = vmatpush.bf16.msra.mxu1 %v2095_v16 }
 0x16c   : > { %2671 = vmatmul.msk.bf16.vlgmr.msrb.gmra.mxu0 %vm1584_vm4, %v1746_v63  ;;  %v1570_v13 = vadd.f32 %v3661_v56, %v1558_v4  ;;  %v1303_v6 = vadd.f32 %v1292_v36, %v1237_v49  ;;  %v1172_v60 = vadd.f32 %v3571_v7, %v1106_v50  ;;  %v1424_v18 = vpop.f32.mrf.mxu3  ;;  %v2029_v7 = vsel %vm1661_vm3, %v2690_v0, 0  ;;  %1972 = vmatpush.bf16.msrb.mxu3 %v1963_v31 }
 0x16d   : > { %2038 = vmatpush.bf16.msra.mxu0 %v2029_v7  ;;  %v2075_v7 = vld [vmem:[#allocation3 + $0x91] sm:$0xff] }
 0x16e   : > { %v1578_v59 = vmax.f32 %v1570_v13, 0.0  ;;  %v1369_v1 = vadd.f32 %v1358_v5, %v1303_v6  ;;  %v1238_v4 = vadd.f32 %v3616_v61, %v1172_v60 }
 0x16f   : > { %v1482_v41 = vpop.f32.mrf.mxu0  ;;  %v1805_v44 = vld [vmem:[#allocation3 + $0x20] sm:$0xff] }
 0x170   : > { %1611 = vst.msk [vmem:[#allocation3 + $0x31] sm:$0xff] %vm1584_vm4, %v1578_v59  ;;  %v1498_v23 = vadd.f32 %v1482_v41, %v1432_v12  ;;  %v1812_v24 = vpack.c.bf16 %v1805_v44, %v1623_v46  ;;  %v3706_v27 = vld [vmem:[#allocation3 + $0x21] sm:$0xff]  ;;  %v1435_v52 = vadd.f32 %v1424_v18, %v1369_v1 }
 0x171   : > { %v3708_v17 = vld [vmem:[#allocation3 + $0x22] sm:$0xff] }
 0x172   : > { %v1559_v32 = vmul.f32 %v3652_v22, %v1498_v23  ;;  %2676 = vmatmul.msk.bf16.vlgmr.msrb.gmra.mxu1 %vm1584_vm4, %v1812_v24  ;;  %v1294_v51 = vpop.f32.mrf.mxu1 }
 0x173   : > { %v1304_v41 = vadd.f32 %v1294_v51, %v1238_v4 }
 0x174   : > { %v1571_v35 = vadd.f32 %v3661_v56, %v1559_v32  ;;  %v1426_v37 = vpop.f32.mrf.mxu3 }
 0x176   : > { %v1579_v43 = vmax.f32 %v1571_v35, 0.0  ;;  %v2700_v35 = vld [vmem:[%s4045_s7 + $0x20] sm:$0xf] }
 0x177   : > { %v1485_v54 = vpop.f32.mrf.mxu0  ;;  %v3710_v38 = vld [vmem:[#allocation3 + $0x31] sm:$0xff] }
 0x178   : > { %v1625_v58 = vld [vmem:[#allocation3 + $0x30] sm:$0xff]  ;;  %1613 = vst.msk [vmem:[#allocation3 + $0x41] sm:$0xff] %vm1584_vm4, %v1579_v43  ;;  %v1499_v11 = vadd.f32 %v1485_v54, %v1433_v39  ;;  %v3717_v2 = vpack.c.bf16 %v3710_v38, %v3706_v27  ;;  %v2161_v43 = vsel %vm1661_vm3, %v2700_v35, 0 }
 0x179   : > { %v3712_v48 = vld [vmem:[#allocation3 + $0x32] sm:$0xff]  ;;  %v3719_v26 = vpack.c.bf16 %v1625_v58, %v1805_v44  ;;  %v1360_v44 = vpop.f32.mrf.mxu2  ;;  %2170 = vmatpush.bf16.msra.mxu2 %v2161_v43 }
 0x17a   : > { %v3723_v55 = vpack.c.bf16 %v3712_v48, %v3708_v17  ;;  %v1560_v33 = vmul.f32 %v3652_v22, %v1499_v11  ;;  %2663 = vmatmul.msk.bf16.gmra.mxu2 %vm1584_vm4, %v3717_v2  ;;  %v1370_v15 = vadd.f32 %v1360_v44, %v1304_v41 }
 0x17b   : > { %2667 = vmatmul.msk.bf16.gmra.mxu3 %vm1584_vm4, %v3719_v26 }
 0x17c   : > { %2672 = vmatmul.msk.bf16.gmra.mxu0 %vm1584_vm4, %v3723_v55  ;;  %v1572_v29 = vadd.f32 %v3661_v56, %v1560_v33  ;;  %v1436_v34 = vadd.f32 %v1426_v37, %v1370_v15 }
 0x17e   : > { %v1580_v46 = vmax.f32 %v1572_v29, 0.0 }
 0x17f   : > { %v1487_v45 = vpop.f32.mrf.mxu0  ;;  %v1807_v9 = vld [vmem:[#allocation3 + $0x40] sm:$0xff] }
 0x180   : > { %1615 = vst.msk [vmem:[#allocation3 + $0x51] sm:$0xff] %vm1584_vm4, %v1580_v46  ;;  %v1500_v63 = vadd.f32 %v1487_v45, %v1434_v53  ;;  %v1813_v8 = vpack.c.bf16 %v1807_v9, %v1625_v58  ;;  %v3752_v12 = vld [vmem:[#allocation3 + $0x41] sm:$0xff] }
 0x181   : > { %v3754_v59 = vld [vmem:[#allocation3 + $0x42] sm:$0xff] }
 0x182   : > { %v1561_v20 = vmul.f32 %v3652_v22, %v1500_v63  ;;  %2677 = vmatmul.msk.bf16.gmra.mxu1 %vm1584_vm4, %v1813_v8  ;;  %v1878_v63 = vpack.c.bf16 %v3706_v27, %v3680_v62  ;;  %v1944_v8 = vpack.c.bf16 %v3708_v17, %v3682_v28  ;;  %v1879_v62 = vpack.c.bf16 %v3752_v12, %v3710_v38 }
 0x183   : > { %v1945_v28 = vpack.c.bf16 %v3754_v59, %v3712_v48 }
 0x184   : > { %v1573_v13 = vadd.f32 %v3661_v56, %v1561_v20  ;;  %v2009_v20 = vld [vmem:[#allocation3 + $0x90] sm:$0xff] }
 0x186   : > { %v1581_v57 = vmax.f32 %v1573_v13, 0.0 }
 0x187   : > { %v1490_v3 = vpop.f32.mrf.mxu0  ;;  %v3756_v21 = vld [vmem:[#allocation3 + $0x51] sm:$0xff] }
 0x188   : > { %v1627_v61 = vld [vmem:[#allocation3 + $0x50] sm:$0xff]  ;;  %1617 = vst.msk [vmem:[#allocation3 + $0x61] sm:$0xff] %vm1584_vm4, %v1581_v57  ;;  %v1501_v24 = vadd.f32 %v1490_v3, %v1435_v52  ;;  %v1645_v47 = vpack.c.bf16 %v3756_v21, %v3752_v12 }
 0x189   : > { %v3758_v23 = vld [vmem:[#allocation3 + $0x52] sm:$0xff]  ;;  %v1632_v14 = vpack.c.bf16 %v1627_v61, %v1807_v9 }
 0x18a   : > { %v3765_v32 = vpack.c.bf16 %v3758_v23, %v3754_v59  ;;  %v1562_v25 = vmul.f32 %v3652_v22, %v1501_v24  ;;  %2664 = vmatmul.msk.bf16.gmra.mxu2 %vm1584_vm4, %v1645_v47 }
 0x18b   : > { %2668 = vmatmul.msk.bf16.gmra.mxu3 %vm1584_vm4, %v1632_v14 }
 0x18c   : > { %2673 = vmatmul.msk.bf16.gmra.mxu0 %vm1584_vm4, %v3765_v32  ;;  %v1574_v39 = vadd.f32 %v3661_v56, %v1562_v25 }
 0x18e   : > { %v1582_v54 = vmax.f32 %v1574_v39, 0.0 }
 0x18f   : > { %v1492_v58 = vpop.f32.mrf.mxu0  ;;  %v1809_v11 = vld [vmem:[#allocation3 + $0x60] sm:$0xff] }
 0x190   : > { %1619 = vst.msk [vmem:[#allocation3 + $0x71] sm:$0xff] %vm1584_vm4, %v1582_v54  ;;  %v1502_v30 = vadd.f32 %v1492_v58, %v1436_v34  ;;  %v1814_v42 = vpack.c.bf16 %v1809_v11, %v1627_v61  ;;  %v1641_v49 = vld [vmem:[#allocation3 + $0x61] sm:$0xff] }
 0x191   : > { %v1744_v29 = vld [vmem:[#allocation3 + $0x62] sm:$0xff] }
 0x192   : > { %v1563_v36 = vmul.f32 %v3652_v22, %v1502_v30  ;;  %2678 = vmatmul.msk.bf16.gmra.mxu1 %vm1584_vm4, %v1814_v42 }
 0x194   : > { %v1575_v33 = vadd.f32 %v3661_v56, %v1563_v36  ;;  %v3792_v56 = vpop.f32.mrf.mxu1 }
 0x196   : > { %v1583_v40 = vmax.f32 %v1575_v33, 0.0 }
 0x197   : > { %v1642_v50 = vld [vmem:[#allocation3 + $0x71] sm:$0xff] }
 0x198   : > { %v1629_v5 = vld [vmem:[#allocation3 + $0x70] sm:$0xff]  ;;  %1621 = vst.msk [vmem:[#allocation3 + $0x81] sm:$0xff] %vm1584_vm4, %v1583_v40  ;;  %v1646_v46 = vpack.c.bf16 %v1642_v50, %v1641_v49 }
 0x199   : > { %v1745_v53 = vld [vmem:[#allocation3 + $0x72] sm:$0xff]  ;;  %v1633_v45 = vpack.c.bf16 %v1629_v5, %v1809_v11 }
 0x19a   : > { %v3786_v9 = vpack.c.bf16 %v1745_v53, %v1744_v29  ;;  %2665 = vmatmul.msk.bf16.gmra.mxu2 %vm1584_vm4, %v1646_v46 }
 0x19b   : > { %2669 = vmatmul.msk.bf16.gmra.mxu3 %vm1584_vm4, %v1633_v45 }
 0x19c   : > { %2674 = vmatmul.msk.bf16.gmra.mxu0 %vm1584_vm4, %v3786_v9  ;;  %v3799_v60 = vpop.f32.mrf.mxu1 }
 0x19f   : > { %v1811_v22 = vld [vmem:[#allocation3 + $0x80] sm:$0xff] }
 0x1a0   : > { %v1815_v6 = vpack.c.bf16 %v1811_v22, %v1629_v5  ;;  %v1877_v48 = vld [vmem:[#allocation3 + $0x81] sm:$0xff]  ;;  %v2013_v4 = vpack.c.bf16 %v2009_v20, %v1811_v22 }
 0x1a1   : > { %v1943_v1 = vld [vmem:[#allocation3 + $0x82] sm:$0xff]  ;;  %v1881_v19 = vpack.c.bf16 %v1877_v48, %v1642_v50  ;;  %v2079_v51 = vpack.c.bf16 %v2075_v7, %v1877_v48 }
 0x1a2   : > { %2679 = vmatmul.msk.bf16.gmra.mxu1 %vm1584_vm4, %v1815_v6  ;;  %v1947_v0 = vpack.c.bf16 %v1943_v1, %v1745_v53 }
 0x1a4   : > { %v3807_v18 = vpop.f32.mrf.mxu1 }
 0x1aa   : > { %2681 = vmatmul.msk.bf16.vlgmr.msrb.gmra.mxu2 %vm1584_vm4, %v1878_v63 }
 0x1ab   : > { %2686 = vmatmul.msk.bf16.vlgmr.msrb.gmra.mxu3 %vm1584_vm4, %v1944_v8 }
 0x1ac   : > { %2691 = vmatmul.msk.bf16.vlgmr.msra.gmra.mxu0 %vm1584_vm4, %v3719_v26  ;;  %v3816_v27 = vpop.f32.mrf.mxu1  ;;  %v1946_v26 = vpack.c.bf16 %v1744_v29, %v3758_v23 }
 0x1b2   : > { %2696 = vmatmul.msk.bf16.vlgmr.msra.gmra.mxu1 %vm1584_vm4, %v3717_v2  ;;  %v1880_v2 = vpack.c.bf16 %v1641_v49, %v3756_v21 }
 0x1b4   : > { %v3819_v17 = vpop.f32.mrf.mxu1 }
 0x1ba   : > { %2682 = vmatmul.msk.bf16.gmra.mxu2 %vm1584_vm4, %v1879_v62 }
 0x1bb   : > { %2687 = vmatmul.msk.bf16.gmra.mxu3 %vm1584_vm4, %v1945_v28 }
 0x1bc   : > { %2692 = vmatmul.msk.bf16.gmra.mxu0 %vm1584_vm4, %v1632_v14  ;;  %v3826_v38 = vpop.f32.mrf.mxu1 }
 0x1c2   : > { %2697 = vmatmul.msk.bf16.gmra.mxu1 %vm1584_vm4, %v1645_v47 }
 0x1c4   : > { %v3832_v31 = vpop.f32.mrf.mxu1 }
 0x1ca   : > { %2683 = vmatmul.msk.bf16.gmra.mxu2 %vm1584_vm4, %v1880_v2 }
 0x1cb   : > { %2688 = vmatmul.msk.bf16.gmra.mxu3 %vm1584_vm4, %v1946_v26 }
 0x1cc   : > { %2693 = vmatmul.msk.bf16.gmra.mxu0 %vm1584_vm4, %v1633_v45  ;;  %v3835_v13 = vpop.f32.mrf.mxu1 }
 0x1d2   : > { %2698 = vmatmul.msk.bf16.gmra.mxu1 %vm1584_vm4, %v1646_v46  ;;  %v2141_v46 = vld [vmem:[#allocation3 + $0x92] sm:$0xff] }
 0x1d3   : > { %v2145_v63 = vpack.c.bf16 %v2141_v46, %v1943_v1 }
 0x1da   : > { %2684 = vmatmul.msk.bf16.gmra.mxu2 %vm1584_vm4, %v1881_v19 }
 0x1db   : > { %2689 = vmatmul.msk.bf16.gmra.mxu3 %vm1584_vm4, %v1947_v0 }
 0x1dc   : > { %2694 = vmatmul.msk.bf16.gmra.mxu0 %vm1584_vm4, %v2013_v4 }
 0x1e2   : > { %2699 = vmatmul.msk.bf16.gmra.mxu1 %vm1584_vm4, %v2079_v51 }
 0x1e9   : > { %v1776_v52 = vpop.f32.mrf.mxu0 }
 0x1ea   : > { %2701 = vmatmul.msk.bf16.vlgmr.msra.gmra.mxu2 %vm1584_vm4, %v3723_v55 }
 0x1ed   : > { %v1674_v57 = vpop.f32.mrf.mxu2 }
 0x1ee   : > { %v1718_v12 = vpop.f32.mrf.mxu3 }
 0x1ef   : > { %v1719_v59 = vadd.f32 %v1718_v12, %v1674_v57  ;;  %v1842_v41 = vpop.f32.mrf.mxu1 }
 0x1f1   : > { %v1778_v44 = vpop.f32.mrf.mxu0  ;;  %v1796_v3 = vadd.f32 %v1776_v52, %v1719_v59 }
 0x1f3   : > { %v1862_v21 = vadd.f32 %v1842_v41, %v1796_v3 }
 0x1f5   : > { %v1676_v61 = vpop.f32.mrf.mxu2 }
 0x1f6   : > { %v1720_v23 = vpop.f32.mrf.mxu3 }
 0x1f7   : > { %v1721_v24 = vadd.f32 %v1720_v23, %v1676_v61  ;;  %v1844_v47 = vpop.f32.mrf.mxu1 }
 0x1f9   : > { %v1781_v14 = vpop.f32.mrf.mxu0  ;;  %v1797_v15 = vadd.f32 %v1778_v44, %v1721_v24 }
 0x1fa   : > { %2702 = vmatmul.msk.bf16.gmra.mxu2 %vm1584_vm4, %v3765_v32 }
 0x1fb   : > { %v1863_v25 = vadd.f32 %v1844_v47, %v1797_v15 }
 0x1fd   : > { %v1679_v37 = vpop.f32.mrf.mxu2 }
 0x1fe   : > { %v1723_v35 = vpop.f32.mrf.mxu3 }
 0x1ff   : > { %v1724_v55 = vadd.f32 %v1723_v35, %v1679_v37  ;;  %v1847_v10 = vpop.f32.mrf.mxu1 }
 0x201   : > { %v1798_v39 = vadd.f32 %v1781_v14, %v1724_v55  ;;  %v1783_v43 = vpop.f32.mrf.mxu0 }
 0x203   : > { %v1864_v16 = vadd.f32 %v1847_v10, %v1798_v39 }
 0x205   : > { %v1681_v34 = vpop.f32.mrf.mxu2 }
 0x206   : > { %v1725_v54 = vpop.f32.mrf.mxu3 }
 0x207   : > { %v1726_v58 = vadd.f32 %v1725_v54, %v1681_v34  ;;  %v1849_v11 = vpop.f32.mrf.mxu1 }
 0x209   : > { %v1799_v30 = vadd.f32 %v1783_v43, %v1726_v58  ;;  %v1786_v36 = vpop.f32.mrf.mxu0 }
 0x20a   : > { %2703 = vmatmul.msk.bf16.gmra.mxu2 %vm1584_vm4, %v3786_v9 }
 0x20b   : > { %v1865_v42 = vadd.f32 %v1849_v11, %v1799_v30 }
 0x20d   : > { %v1684_v33 = vpop.f32.mrf.mxu2 }
 0x20e   : > { %v1728_v40 = vpop.f32.mrf.mxu3 }
 0x20f   : > { %v1729_v32 = vadd.f32 %v1728_v40, %v1684_v33  ;;  %v1852_v49 = vpop.f32.mrf.mxu1 }
 0x211   : > { %v1800_v29 = vadd.f32 %v1786_v36, %v1729_v32  ;;  %v1788_v22 = vpop.f32.mrf.mxu0 }
 0x213   : > { %v1866_v50 = vadd.f32 %v1852_v49, %v1800_v29 }
 0x215   : > { %v1686_v5 = vpop.f32.mrf.mxu2 }
 0x216   : > { %v1730_v53 = vpop.f32.mrf.mxu3 }
 0x217   : > { %v1731_v45 = vadd.f32 %v1730_v53, %v1686_v5  ;;  %v1854_v8 = vpop.f32.mrf.mxu1 }
 0x219   : > { %v1801_v6 = vadd.f32 %v1788_v22, %v1731_v45  ;;  %v1791_v7 = vpop.f32.mrf.mxu0 }
 0x21a   : > { %2704 = vmatmul.msk.bf16.gmra.mxu2 %vm1584_vm4, %v2145_v63 }
 0x21b   : > { %v1867_v62 = vadd.f32 %v1854_v8, %v1801_v6 }
 0x21d   : > { %v1689_v28 = vpop.f32.mrf.mxu2 }
 0x21e   : > { %v1733_v4 = vpop.f32.mrf.mxu3 }
 0x21f   : > { %v1857_v57 = vpop.f32.mrf.mxu1  ;;  %v1734_v32 = vadd.f32 %v1733_v4, %v1689_v28 }
 0x221   : > { %v1793_v41 = vpop.f32.mrf.mxu0  ;;  %v1802_v29 = vadd.f32 %v1791_v7, %v1734_v32 }
 0x223   : > { %v1868_v63 = vadd.f32 %v1857_v57, %v1802_v29 }
 0x225   : > { %v1691_v9 = vpop.f32.mrf.mxu2 }
 0x226   : > { %v1735_v12 = vpop.f32.mrf.mxu3 }
 0x227   : > { %v1859_v44 = vpop.f32.mrf.mxu1  ;;  %v1736_v5 = vadd.f32 %v1735_v12, %v1691_v9 }
 0x229   : > { %v2040_v24 = vpop.f32.mrf.mxu0 }
 0x22d   : > { %v1908_v2 = vpop.f32.mrf.mxu2 }
 0x22e   : > { %v1928_v26 = vadd.f32 %v1908_v2, %v1862_v21  ;;  %v1974_v3 = vpop.f32.mrf.mxu3  ;;  %v2231_v21 = vld [vmem:[%s4049_s8] sm:$0xff] }
 0x22f   : > { %2253 = vmatpush.msra.mxu3 %v2231_v21  ;;  %v2106_v47 = vpop.f32.mrf.mxu1 }
 0x230   : > { %v1994_v53 = vadd.f32 %v1974_v3, %v1928_v26 }
 0x232   : > { %v2060_v2 = vadd.f32 %v2040_v24, %v1994_v53 }
 0x234   : > { %v2126_v7 = vadd.f32 %v2106_v47, %v2060_v2 }
 0x235   : > { %v1910_v48 = vpop.f32.mrf.mxu2 }
 0x236   : > { %v1929_v20 = vadd.f32 %v1910_v48, %v1863_v25  ;;  %v1976_v15 = vpop.f32.mrf.mxu3  ;;  %v2042_v25 = vpop.f32.mrf.mxu0 }
 0x237   : > { %v2108_v35 = vpop.f32.mrf.mxu1 }
 0x23d   : > { %v1913_v19 = vpop.f32.mrf.mxu2 }
 0x23e   : > { %v1930_v0 = vadd.f32 %v1913_v19, %v1864_v16  ;;  %v1979_v55 = vpop.f32.mrf.mxu3  ;;  %v2045_v10 = vpop.f32.mrf.mxu0 }
 0x23f   : > { %v2111_v43 = vpop.f32.mrf.mxu1 }
 0x240   : > { %v1996_v45 = vadd.f32 %v1979_v55, %v1930_v0  ;;  %v2882_v55 = vmov 64.0  }
 0x241   : > { %2773 = vrcp.f32 %v2882_v55  ;;  %v2234_v55 = vld [vmem:[%s4005_s11] sm:$0x1] }
 0x242   : > { %v2062_v19 = vadd.f32 %v2045_v10, %v1996_v45 }
 0x244   : > { %v2128_v26 = vadd.f32 %v2111_v43, %v2062_v19 }
 0x245   : > { %v1915_v51 = vpop.f32.mrf.mxu2 }
 0x246   : > { %v1931_v52 = vadd.f32 %v1915_v51, %v1865_v42  ;;  %v1981_v16 = vpop.f32.mrf.mxu3  ;;  %v2047_v54 = vpop.f32.mrf.mxu0 }
 0x247   : > { %v2113_v58 = vpop.f32.mrf.mxu1 }
 0x248   : > { %v1997_v22 = vadd.f32 %v1981_v16, %v1931_v52 }
 0x24d   : > { %v1918_v59 = vpop.f32.mrf.mxu2 }
 0x24e   : > { %v1932_v1 = vadd.f32 %v1918_v59, %v1866_v50  ;;  %v1984_v11 = vpop.f32.mrf.mxu3  ;;  %v2050_v42 = vpop.f32.mrf.mxu0  ;;  %v1995_v50 = vadd.f32 %v1976_v15, %v1929_v20 }
 0x24f   : > { %v2116_v36 = vpop.f32.mrf.mxu1 }
 0x250   : > { %v2061_v8 = vadd.f32 %v2042_v25, %v1995_v50  ;;  %v1998_v51 = vadd.f32 %v1984_v11, %v1932_v1 }
 0x252   : > { %v2127_v28 = vadd.f32 %v2108_v35, %v2061_v8  ;;  %v2064_v12 = vadd.f32 %v2050_v42, %v1998_v51 }
 0x255   : > { %v1920_v61 = vpop.f32.mrf.mxu2 }
 0x256   : > { %v1933_v23 = vadd.f32 %v1920_v61, %v1867_v62  ;;  %v1986_v40 = vpop.f32.mrf.mxu3  ;;  %v2052_v49 = vpop.f32.mrf.mxu0  ;;  %v1803_v62 = vadd.f32 %v1793_v41, %v1736_v5  ;;  %v2063_v61 = vadd.f32 %v2047_v54, %v1997_v22 }
 0x257   : > { %v2118_v6 = vpop.f32.mrf.mxu1 }
 0x258   : > { %v1999_v21 = vadd.f32 %v1986_v40, %v1933_v23  ;;  %v1869_v4 = vadd.f32 %v1859_v44, %v1803_v62  ;;  %v2129_v57 = vadd.f32 %v2113_v58, %v2063_v61  ;;  %v2233_v44 = vld [vmem:[%s4004_s10] sm:$0x3]  ;;  %v2130_v23 = vadd.f32 %v2116_v36, %v2064_v12 }
 0x259   : > { %2706 = vmatpush.msk.msrb.mxu3 %vm964_vm0, %v2233_v44  ;;  %v2286_v12 = vld [vmem:[%s4006_s12] sm:$0xff] }
 0x25a   : > { %v2065_v3 = vadd.f32 %v2052_v49, %v1999_v21  ;;  %v2774_v49 = vpop.eup %2773  ;;  %v2288_v44 = vld [vmem:[%s4008_s14] sm:$0x3] }
 0x25b   : > { %v2222_v22 = vmul.f32 64.0, %v2774_v49  ;;  %vm2226_vm6 = vweird.f32 %v2774_v49 }
 0x25c   : > { %v2131_v35 = vadd.f32 %v2118_v6, %v2065_v3 }
 0x25d   : > { %v1923_v14 = vpop.f32.mrf.mxu2 }
 0x25e   : > { %v1989_v48 = vpop.f32.mrf.mxu3  ;;  %v1934_v59 = vadd.f32 %v1923_v14, %v1868_v63  ;;  %v2055_v20 = vpop.f32.mrf.mxu0 }
 0x25f   : > { %v2121_v1 = vpop.f32.mrf.mxu1 }
 0x260   : > { %v2000_v0 = vadd.f32 %v1989_v48, %v1934_v59  ;;  %v2223_v48 = vsub.f32 1.0, %v2222_v22 }
 0x262   : > { %v2066_v47 = vadd.f32 %v2055_v20, %v2000_v0  ;;  %v2224_v59 = vmul.f32 %v2774_v49, %v2223_v48  ;;  %v2232_v0 = vld [vmem:[%s4003_s9] sm:$0x1] }
 0x264   : > { %v2132_v58 = vadd.f32 %v2121_v1, %v2066_v47  ;;  %v2229_v1 = vld [vmem:[%s668_s1] sm:$0x1]  ;;  %s2479_s1 = sshll.u32 %s2475_s29, 4  ;;  %s2480_s1 = int_to_ptr.hbm [resolvable:$true] %s2479_s1 }
 0x265   : > { %v1925_v37 = vpop.f32.mrf.mxu2  ;;  %v2287_v47 = vld [vmem:[%s4007_s13] sm:$0x1] }
 0x266   : > { %v1935_v41 = vadd.f32 %v1925_v37, %v1869_v4  ;;  %v1991_v37 = vpop.f32.mrf.mxu3  ;;  %v2057_v42 = vpop.f32.mrf.mxu0 }
 0x267   : > { %v2123_v5 = vpop.f32.mrf.mxu1 }
 0x268   : > { %v2001_v10 = vadd.f32 %v1991_v37, %v1935_v41 }
 0x26d   : > { %v2172_v39 = vpop.f32.mrf.mxu2 }
 0x26e   : > { %v3849_v24 = vadd.f32 %v2172_v39, %v2126_v7 }
 0x270   : > { %v2200_v39 = vsel %vm1584_vm4, %v3849_v24, 0.0 }
 0x275   : > { %v2174_v34 = vpop.f32.mrf.mxu2 }
 0x276   : > { %v3847_v52 = vadd.f32 %v2174_v34, %v2127_v28  ;;  %v2225_v28 = vadd.f32 %v2774_v49, %v2224_v59 }
 0x278   : > { %v2201_v14 = vsel %vm1584_vm4, %v3847_v52, 0.0  ;;  %v2227_v20 = vsel %vm2226_vm6, %v2774_v49, %v2225_v28 }
 0x279   : > { %v2202_v34 = vadd.f32 %v2201_v14, %v2200_v39 }
 0x27d   : > { %v2177_v30 = vpop.f32.mrf.mxu2 }
 0x27e   : > { %v3851_v15 = vadd.f32 %v2177_v30, %v2128_v26 }
 0x280   : > { %v2203_v43 = vsel %vm1584_vm4, %v3851_v15, 0.0 }
 0x281   : > { %v2204_v36 = vadd.f32 %v2203_v43, %v2202_v34 }
 0x285   : > { %v2179_v33 = vpop.f32.mrf.mxu2 }
 0x286   : > { %v3858_v25 = vadd.f32 %v2179_v33, %v2129_v57  ;;  %v2067_v33 = vadd.f32 %v2057_v42, %v2001_v10  ;;  %v2289_v10 = vld [vmem:[%s4009_s15] sm:$0x1] }
 0x288   : > { %v2205_v11 = vsel %vm1584_vm4, %v3858_v25, 0.0 }
 0x289   : > { %v2206_v29 = vadd.f32 %v2205_v11, %v2204_v36  ;;  %v2772_v11 = vld [vmem:[%s671_s3] ss:$0 sm:$0xff] }
 0x28d   : > { %v2182_v46 = vpop.f32.mrf.mxu2 }
 0x28e   : > { %v3865_v16 = vadd.f32 %v2182_v46, %v2130_v23  ;;  %v2133_v46 = vadd.f32 %v2123_v5, %v2067_v33 }
 0x290   : > { %v2207_v40 = vsel %vm1584_vm4, %v3865_v16, 0.0 }
 0x291   : > { %v2208_v53 = vadd.f32 %v2207_v40, %v2206_v29 }
 0x295   : > { %v2184_v9 = vpop.f32.mrf.mxu2 }
 0x296   : > { %v3869_v30 = vadd.f32 %v2184_v9, %v2131_v35 }
 0x298   : > { %v2209_v50 = vsel %vm1584_vm4, %v3869_v30, 0.0 }
 0x299   : > { %v2210_v6 = vadd.f32 %v2209_v50, %v2208_v53 }
 0x29d   : > { %v2187_v54 = vpop.f32.mrf.mxu2 }
 0x29e   : > { %v3873_v32 = vadd.f32 %v2187_v54, %v2132_v58 }
 0x2a0   : > { %v2211_v45 = vsel %vm1584_vm4, %v3873_v32, 0.0 }
 0x2a1   : > { %v2212_v62 = vadd.f32 %v2211_v45, %v2210_v6 }
 0x2a5   : > { %v2189_v63 = vpop.f32.mrf.mxu2 }
 0x2a6   : > { %v3879_v8 = vadd.f32 %v2189_v63, %v2133_v46 }
 0x2a8   : > { %v2213_v2 = vsel %vm1584_vm4, %v3879_v8, 0.0 }
 0x2a9   : > { %v2214_v19 = vadd.f32 %v2213_v2, %v2212_v62 }
 0x2ab   : > { %v2215_v51 = vrot.slane %v2214_v19, 4 }
 0x2ad   : > { %v2216_v61 = vadd.f32 %v2215_v51, %v2214_v19 }
 0x2af   : > { %v2217_v21 = vrot.slane %v2216_v61, 2 }
 0x2b1   : > { %v2218_v4 = vadd.f32 %v2217_v21, %v2216_v61 }
 0x2b3   : > { %v2219_v7 = vrot.slane %v2218_v4, 1 }
 0x2b5   : > { %v2220_v9 = vadd.f32 %v2219_v7, %v2218_v4 }
 0x2b7   : > { %v2228_v26 = vmul.f32 %v2227_v20, %v2220_v9 }
 0x2b9   : > { %2705 = vmatmul.msk.f32.vlgmr.msra.gmra.mxu3 %vm1584_vm4, %v2228_v26 }
 0x2ba   : > { %2308 = vmatpush.msra.mxu3 %v2286_v12 }
 0x33c   : > { %v2255_v57 = vpop.f32.mrf.mxu3 }
 0x33d   : > { %v2256_v3 = vadd.f32 %v2255_v57, %v2232_v0 }
 0x33f   : > { %v2258_v41 = vmax.f32 %v2256_v3, 0.0 }
 0x341   : > { %2707 = vmatmul.msk.f32.vlgmr.msrb.gmra.mxu3 %vm2259_vm7, %v2258_v41 }
 0x342   : > { %2709 = vmatpush.msk.msrb.mxu3 %vm964_vm0, %v2288_v44  ;;  %vm2434_vm0 = vcmask 57344  }
 0x349   : > { %2708 = vmatmul.msk.f32.vlgmr.msra.gmra.mxu3 %vm1584_vm4, %v2229_v1 }
 0x3c4   : > { %v2283_v23 = vpop.f32.mrf.mxu3 }
 0x3c5   : > { %v2284_v43 = vadd.f32 %v2283_v23, %v2234_v55 }
 0x3cc   : > { %v2310_v14 = vpop.f32.mrf.mxu3 }
 0x3cd   : > { %v2311_v35 = vadd.f32 %v2310_v14, %v2287_v47 }
 0x3cf   : > { %v2313_v37 = vmax.f32 %v2311_v35, 0.0 }
 0x3d1   : > { %2710 = vmatmul.msk.f32.vlgmr.msrb.gmra.mxu3 %vm2259_vm7, %v2313_v37 }
 0x454   : > { %v2337_v39 = vpop.f32.mrf.mxu3 }
 0x455   : > { %v2338_v34 = vadd.f32 %v2337_v39, %v2289_v10 }
 0x457   : > { %v2340_v54 = vadd.f32 %v2338_v34, %v2284_v43 }
 0x459   : > { %2775 = vtanh.f32 %v2340_v54  ;;  %v2711_v42 = vmul.f32 -1.442695, %v2340_v54 }
 0x45b   : > { %2777 = vpow2.f32 %v2711_v42 }
 0x45f   : > { %v2776_v58 = vpop.eup %2775 }
 0x460   : > { %2368 = vrot.lane.b32.xlu0 %v2776_v58, %s2883_s24  ;;  %s2451_s24 = scalar_lea.sflag [#allocation7], %s3913_s26 }
 0x461   : > { %v2778_v36 = vpop.eup %2777 }
 0x462   : > { %v2344_v33 = vadd.f32 1.0, %v2778_v36 }
 0x464   : > { %2779 = vrcp.f32 %v2344_v33  ;;  %v2356_v53 = vand.u32 2147483648, %v2344_v33  ;;  %vm2350_vm9 = vweird.f32 %v2344_v33  ;;  %v2354_v46 = vand.u32 2147483647, %v2344_v33 }
 0x466   : > { %v2357_v22 = vor.u32 1.1754944e-38, %v2356_v53  ;;  %vm2355_vm11 = vcmp.eq.f32.partialorder %v2354_v46, 8.507059e+37 }
 0x468   : > { %2363 = vrot.lane.b32.xlu0 %v2772_v11, %s2884_s0 }
 0x46a   : > { %v2780_v40 = vpop.eup %2779 }
 0x46b   : > { %v2346_v49 = vmul.f32 %v2780_v40, %v2344_v33  ;;  %vm2351_vm8 = vweird.f32 %v2780_v40 }
 0x46c   : > { %vm2352_vm10 = vmor %vm2350_vm9, %vm2351_vm8 }
 0x46d   : > { %v2347_v29 = vsub.f32 1.0, %v2346_v49 }
 0x46f   : > { %v2348_v50 = vmul.f32 %v2780_v40, %v2347_v29 }
 0x471   : > { %v2349_v5 = vadd.f32 %v2780_v40, %v2348_v50 }
 0x473   : > { %v2353_v45 = vsel %vm2352_vm10, %v2780_v40, %v2349_v5 }
 0x474   : > { %v2358_v63 = vsel %vm2355_vm11, %v2357_v22, %v2353_v45 }
 0x4d2   : > { %v2369_v6 = vpop.permute.xlu0 %2368 }
 0x4d3   : > { %v2371_v62 = vmul.f32 %v2369_v6, %v2358_v63 }
 0x4d5   : > { %2373 = vrot.lane.b32.xlu1 %v2371_v62, %s2884_s0  ;;  %s2799_s0 = sshra.s32 %s2480_s1, 4  ;;  %s2800_s0 = int_to_ptr.hbm [resolvable:$true] %s2799_s0 }
 0x4d6   : > { %p2806_p0 = scmp.lt.s32.totalorder %s2800_s0, %s4014_s20 }
 0x4da   : > { %v2364_v2 = vpop.permute.xlu0 %2363 }
 0x4db   : > { %v2366_v48 = vmul.f32 %v2364_v2, %v2358_v63 }
 0x547   : > { %v2374_v19 = vpop.permute.xlu1 %2373 }
 0x548   : > { %v2376_v51 = vadd.f32 %v2374_v19, %v2366_v48 }
 0x54a   : > { %v2712_v59 = vmul.f32 -1.442695, %v2376_v51  ;;  %2437 = vrot.lane.b32.xlu0 %v2376_v51, %s2885_s25  ;;  %s2801_s25 = scalar_lea.hbm %s2800_s0, 1 }
 0x54b   : > { %p2802_p11 = scmp.ne.s32.totalorder %s2800_s0, %s2801_s25  ;;  %p2807_p1 = scmp.lt.s32.totalorder %s2805_s6, %s2801_s25 }
 0x54c   : > { %2781 = vpow2.f32 %v2712_v59 }
 0x54d   : > { %p2803_p12 = pnand %p2802_p11, %p3031_p5  ;;  %p2808_p2 = por %p2807_p1, %p2806_p0 }
 0x54f   : > { %p2804_p13 = pneg %p2803_p12 }
 0x551   : > { %p2809_p3 = pnand %p2808_p2, %p2804_p13 }
 0x552   : > { %v2782_v61 = vpop.eup %2781 }
 0x553   : > { %v2380_v21 = vadd.f32 1.0, %v2782_v61 }
 0x555   : > { %2783 = vrcp.f32 %v2380_v21  ;;  %v2392_v20 = vand.u32 2147483648, %v2380_v21  ;;  %v2390_v26 = vand.u32 2147483647, %v2380_v21  ;;  %vm2386_vm13 = vweird.f32 %v2380_v21 }
 0x557   : > { %v2393_v0 = vor.u32 1.1754944e-38, %v2392_v20  ;;  %vm2391_vm15 = vcmp.eq.f32.partialorder %v2390_v26, 8.507059e+37 }
 0x55b   : > { %v2784_v28 = vpop.eup %2783 }
 0x55c   : > { %v2382_v4 = vmul.f32 %v2784_v28, %v2380_v21  ;;  %vm2387_vm12 = vweird.f32 %v2784_v28 }
 0x55d   : > { %vm2388_vm14 = vmor %vm2386_vm13, %vm2387_vm12 }
 0x55e   : > { %v2383_v7 = vsub.f32 1.0, %v2382_v4 }
 0x560   : > { %v2384_v9 = vmul.f32 %v2784_v28, %v2383_v7 }
 0x562   : > { %v2385_v12 = vadd.f32 %v2784_v28, %v2384_v9 }
 0x564   : > { %v2389_v57 = vsel %vm2388_vm14, %v2784_v28, %v2385_v12 }
 0x565   : > { %v2394_v3 = vsel %vm2391_vm15, %v2393_v0, %v2389_v57 }
 0x566   : > { %2397 = vrot.lane.b32.xlu1 %v2394_v3, %s2886_s28 }
 0x5bc   : > { %v2438_v41 = vpop.permute.xlu0 %2437 }
 0x5bd   : > { %2440 = vst.msk [vmem:[%s660_s23] sm:$0x1] %vm2434_vm0, %v2438_v41 }
 0x5be   : > { %2812 = shalt.err (!%p2809_p3)
}
 0x5bf   : > { %2718 = dma.vmem_to_hbm [thread:$0]  (%p3031_p5), %s2478_s19, 16, %s2480_s1, %s2451_s24  }
 0x5c0   : > { %s2887_s23 = smov 104   ;;  %s2716_s5 = sshll.u32 %s3059_s30, 6 }
 0x5c1   : > { %s676_s8 = scalar_lea.vmem %s4012_s18, %s2716_s5  ;;  %s4050_s27 = sld [smem:[#allocation25_spill]] }
 0x5c2   : > { %s654_s19 = scalar_lea.vmem [#allocation4], %s3913_s26 }
 0x5c3   : > { %s2464_s1 = sshll.u32 %s654_s19, 4  ;;  %s2465_s1 = int_to_ptr.vmem [resolvable:$true] %s2464_s1 }
 0x5c7   : > { %s2462_s29 = scalar_lea.hbm %s4050_s27, %s3014_s2  ;;  %s2447_s2 = scalar_lea.sflag [#allocation5], %s3913_s26 }
 0x5c8   : > { %s2466_s24 = sshll.u32 %s2462_s29, 4  ;;  %s2833_s5 = scalar_lea.hbm %s4050_s27, 2  ;;  %s2467_s24 = int_to_ptr.hbm [resolvable:$true] %s2466_s24 }
 0x5c9   : > { %s2827_s0 = sshra.s32 %s2467_s24, 4  ;;  %s2828_s0 = int_to_ptr.hbm [resolvable:$true] %s2827_s0 }
 0x5ca   : > { %s2829_s25 = scalar_lea.hbm %s2828_s0, 1  ;;  %p2834_p9 = scmp.lt.s32.totalorder %s2828_s0, %s4050_s27 }
 0x5cb   : > { %p2830_p4 = scmp.ne.s32.totalorder %s2828_s0, %s2829_s25  ;;  %p2835_p10 = scmp.lt.s32.totalorder %s2833_s5, %s2829_s25 }
 0x5cd   : > { %p2831_p7 = pnand %p2830_p4, %p3031_p5  ;;  %p2836_p11 = por %p2835_p10, %p2834_p9 }
 0x5cf   : > { %p2832_p8 = pneg %p2831_p7 }
 0x5d1   : > { %p2837_p12 = pnand %p2836_p11, %p2832_p8 }
 0x5d8   : > { %v2398_v1 = vpop.permute.xlu1 %2397 }
 0x5d9   : > { %v2400_v44 = vmul.f32 %v2398_v1, %v2358_v63 }
 0x5db   : > { %v2401_v23 = vperm.slane %v2400_v44, 0 }
 0x5dd   : > { %2403 = vrot.lane.b32.xlu2 %v2401_v23, %s2887_s23 }
 0x5e5   : > { %2431 = vrot.lane.b32.xlu2 %v2400_v44, %s2887_s23 }
 0x637   : > { %v2404_v47 = vpop.permute.xlu2 %2403 }
 0x638   : > { %v2406_v14 = vmul.f32 %v2404_v47, %v3849_v24  ;;  %v2407_v35 = vmul.f32 %v2404_v47, %v3847_v52  ;;  %v2408_v37 = vmul.f32 %v2404_v47, %v3851_v15  ;;  %v2409_v55 = vmul.f32 %v2404_v47, %v3858_v25 }
 0x639   : > { %v2410_v10 = vmul.f32 %v2404_v47, %v3865_v16  ;;  %v2411_v39 = vmul.f32 %v2404_v47, %v3869_v30  ;;  %v2412_v43 = vmul.f32 %v2404_v47, %v3873_v32  ;;  %v2413_v15 = vmul.f32 %v2404_v47, %v3879_v8 }
 0x63a   : > { %v2414_v34 = vadd.f32 %v2406_v14, %v3792_v56  ;;  %v2415_v24 = vadd.f32 %v2407_v35, %v3799_v60  ;;  %v2416_v52 = vadd.f32 %v2408_v37, %v3807_v18  ;;  %v2417_v25 = vadd.f32 %v2409_v55, %v3816_v27 }
 0x63b   : > { %v2418_v54 = vadd.f32 %v2410_v10, %v3819_v17  ;;  %v2419_v16 = vadd.f32 %v2411_v39, %v3826_v38  ;;  %v2420_v56 = vadd.f32 %v2412_v43, %v3832_v31  ;;  %v2421_v60 = vadd.f32 %v2413_v15, %v3835_v13 }
 0x63c   : > { %2422 = vst.msk [vmem:[%s676_s8] sm:$0xff] %vm1584_vm4, %v2414_v34 }
 0x63d   : > { %2423 = vst.msk [vmem:[%s676_s8 + $0x8] sm:$0xff] %vm1584_vm4, %v2415_v24 }
 0x63e   : > { %2424 = vst.msk [vmem:[%s676_s8 + $0x10] sm:$0xff] %vm1584_vm4, %v2416_v52 }
 0x63f   : > { %2425 = vst.msk [vmem:[%s676_s8 + $0x18] sm:$0xff] %vm1584_vm4, %v2417_v25  ;;  %v2432_v18 = vpop.permute.xlu2 %2431 }
 0x640   : > { %2426 = vst.msk [vmem:[%s676_s8 + $0x20] sm:$0xff] %vm1584_vm4, %v2418_v54 }
 0x641   : > { %2427 = vst.msk [vmem:[%s676_s8 + $0x28] sm:$0xff] %vm1584_vm4, %v2419_v16 }
 0x642   : > { %2428 = vst.msk [vmem:[%s676_s8 + $0x30] sm:$0xff] %vm1584_vm4, %v2420_v56 }
 0x643   : > { %2429 = vst.msk [vmem:[%s676_s8 + $0x38] sm:$0xff] %vm1584_vm4, %v2421_v60 }
 0x644   : > { %2435 = vst.msk [vmem:[%s654_s19] sm:$0x1] %vm2434_vm0, %v2432_v18 }
 0x645   : > { %2840 = shalt.err (!%p2837_p12)
}
 0x646   : > { %2717 = dma.vmem_to_hbm [thread:$0]  (%p3031_p5), %s2465_s1, 16, %s2467_s24, %s2447_s2  }
 0x647 PF: > { %s4051_s26 = sld [smem:[#allocation12_spill]] }
 0x648   : > { %s4052_s8 = sld [smem:[#allocation10_spill]] }
 0x64d   : > { %p2728_p13 = scmp.ge.s32.totalorder %s4051_s26, 2 }
 0x64e   : > { %s2499_s3 = sand.u32 1, %s4052_s8  }
 0x64f   : > { %p2722_p0 = pnand %p2728_p13, %p3035_p6  ;;  %s2500_s29 = scalar_lea.sflag [#allocation5], %s2499_s3 }
 0x651   : > { %p2723_p1 = pneg %p2722_p0 }
 0x653   : > { %2858 = dma.done.wait (%p2723_p1), %s2500_s29, 16  }
 0x654   : > { %2860 = vsyncadd (%p2723_p1), %s2500_s29, 4294967280  ;;  %s2509_s19 = scalar_lea.sflag [#allocation7], %s2499_s3 }
 0x655   : > { %2862 = dma.done.wait (%p2723_p1), %s2509_s19, 16  }
 0x656   : > { %2864 = vsyncadd (%p2723_p1), %s2509_s19, 4294967280  ;;  %s4054_s24 = sld [smem:[#allocation13_spill]]  ;;  %s4057_s1 = smov %s2871_s22 }
 0x657   : > { %s4055_s0 = sld [smem:[#allocation11_spill]] }
 0x658   : > { %s4056_s23 = sld [smem:[#allocation14_spill]] }
 0x65c   : > { %p34_p5 = scmp.ge.s32.totalorder %s4054_s24, 4  }
 0x65d   : > { %s4058_s22 = smov %s4055_s0 }
 0x65e   :  { %36 = sbr.rel (!%p34_p5) target bundleno = 16 (0x10), region = 191 }
 0x663   :  { %2514 = vsyncpa [#allocation5], 1 }
 0x664   :  { %2516 = vsyncpa [#allocation5 + $0x1], 1 }
 0x665   :  { %2517 = vsyncpa [#allocation7], 1 }
 0x666   :  { %2519 = vsyncpa [#allocation7 + $0x1], 1 }

</bundles_post_ra>
